<compile_context>
chip_gen: v7x
topology: tpu7x:2x2x1
jax: 0.10.0
libtpu: 0.0.40
codegen_flags: <defaults>
</compile_context>

<pallas_src>
import functools

import numpy as np

import jax
import jax.numpy as jnp
from jax.experimental import pallas as pl
from jax.experimental.pallas import tpu as pltpu

# Tap orderings shared by the host-side weight assembly and the kernel.
TAPS9 = tuple((dy, dx) for dy in (-1, 0, 1) for dx in (-1, 0, 1))   # 3x3 conv
TAPS5 = ((-1, 0), (0, -1), (0, 0), (0, 1), (1, 0))                  # fused 1x3 + 3x1
TAP1 = ((0, 0),)                                                    # 1x1 conv

# bf16 matmul inputs: ~2x MXU rate on v6e/v7x and avoids f32 multi-pass on v5e.
# Accumulation and all elementwise math stay float32.  Set to jnp.float32 to
# recover bit-exact f32 forward semantics (outputs then match an f32 reference
# exactly; with bf16 they drift by ~1e-3 relative).
MATMUL_DTYPE = jnp.bfloat16


# ---------------------------------------------------------------------------
# The single fused kernel: all convs + maxpool + SE for Bb images at a time.
# ---------------------------------------------------------------------------
def _inception_se_kernel(x_ref, mask_ref, pool_ref, bcast_ref,
                         w_stem_ref, b_stem_ref,
                         w_b3_ref, b_b3_ref,
                         w_mid_ref, b_mid_ref,
                         w_b4_ref, b_b4_ref,
                         se_w1_ref, se_w2_ref,
                         o_ref, *, H, W, Bb, c1, c2r, c3r2, c_b2, c_b3):
    S = H * W
    L = Bb * S
    x = x_ref[...]                      # (Cin, Bb*S) f32, batch folded in lanes
    mask = mask_ref[...]                # (16, Bb*S) f32; row = 3*(dy+1)+(dx+1)

    def mrow(dy, dx):
        return mask[3 * (dy + 1) + (dx + 1)]        # (L,)

    def shift(v, dy, dx):
        # result[:, p] = v[:, p + dy*W + dx] if that tap lies inside the SAME
        # image, else 0 (zero padding + cross-image isolation via the mask).
        d = dy * W + dx
        if d == 0:
            return v
        r = pltpu.roll(v, shift=(-d) % L, axis=1)   # XLU lane rotation
        return r * mrow(dy, dx)

    def im2col(v, taps):
        parts = [shift(v, dy, dx) for (dy, dx) in taps]
        return parts[0] if len(parts) == 1 else jnp.concatenate(parts, axis=0)

    def conv_relu(vin, w_ref, b_ref):
        # One MXU matmul per conv (bf16 inputs, f32 accumulate).  BN scale is
        # pre-folded into the weights, so only bias-add + ReLU remain.
        y = jnp.dot(w_ref[...].astype(MATMUL_DTYPE), vin.astype(MATMUL_DTYPE),
                    preferred_element_type=jnp.float32)
        return jnp.maximum(y + b_ref[...], 0.0)

    # Fused 1x1 stem over x: rows = [branch1 | branch2_0 | branch3_0a].
    stem = conv_relu(x, w_stem_ref, b_stem_ref)
    o_ref[0:c1, :] = stem[0:c1, :]                  # branch1 written in place
    b2_0 = stem[c1:c1 + c2r, :]
    b3_0a = stem[c1 + c2r:c1 + c2r + c3r2, :]

    # branch3_0 second conv: 3x3, pad 1 (9-tap im2col, one matmul).
    b3_0 = conv_relu(im2col(b3_0a, TAPS9), w_b3_ref, b_b3_ref)

    # Fused [branch2_1 | branch2_2 | branch3_1 | branch3_2]: ONE block-diagonal
    # matmul over the stacked 5-tap im2cols of b2_0 and b3_0.
    vin_mid = jnp.concatenate([im2col(b2_0, TAPS5), im2col(b3_0, TAPS5)], axis=0)
    o_ref[c1:c1 + c_b2 + c_b3, :] = conv_relu(vin_mid, w_mid_ref, b_mid_ref)

    # branch4: MaxPool(3x3, s1, p1), separable via rolls with -inf edges, then 1x1.
    NEG = jnp.float32(-1e30)
    m1 = x
    for dx in (-1, 1):
        r = pltpu.roll(x, shift=(-dx) % L, axis=1)
        m1 = jnp.maximum(m1, jnp.where(mrow(0, dx) > 0.5, r, NEG))
    mp = m1
    for dy in (-1, 1):
        r = pltpu.roll(m1, shift=(-dy * W) % L, axis=1)
        mp = jnp.maximum(mp, jnp.where(mrow(dy, 0) > 0.5, r, NEG))
    o_ref[c1 + c_b2 + c_b3:, :] = conv_relu(mp, w_b4_ref, b_b4_ref)

    # SE block (PER IMAGE): GAP -> FC -> ReLU -> FC -> sigmoid -> channel scale.
    yc = o_ref[...]                                                # (C_total, L)
    gap = jnp.dot(yc, pool_ref[...],
                  preferred_element_type=jnp.float32)              # (C_total, Bb)
    h = jnp.maximum(jnp.dot(se_w1_ref[...], gap,
                            preferred_element_type=jnp.float32), 0.0)
    se = jax.nn.sigmoid(jnp.dot(se_w2_ref[...], h,
                                preferred_element_type=jnp.float32))  # (C_total, Bb)
    gate = jnp.dot(se, bcast_ref[...],
                   preferred_element_type=jnp.float32)             # (C_total, L)
    o_ref[...] = yc * gate


# ---------------------------------------------------------------------------
# Host-side helpers: masks, SE pooling matrices, weight assembly, BN folding.
# ---------------------------------------------------------------------------
def _make_shift_mask(H, W, Bb):
    """(16, Bb*H*W) f32: row 3*(dy+1)+(dx+1) is 1.0 where (h+dy, w+dx) stays in
    the same image (zero padding + cross-image isolation in one multiply)."""
    S = H * W
    hh, ww = np.meshgrid(np.arange(H), np.arange(W), indexing="ij")
    hh = hh.reshape(-1)
    ww = ww.reshape(-1)
    m = np.zeros((16, S), np.float32)
    for dy in (-1, 0, 1):
        for dx in (-1, 0, 1):
            valid = ((hh + dy >= 0) & (hh + dy < H) &
                     (ww + dx >= 0) & (ww + dx < W))
            m[3 * (dy + 1) + (dx + 1)] = valid.astype(np.float32)
    return jnp.asarray(np.tile(m, (1, Bb)))


def _make_se_pool_mats(S, Bb):
    """pool (Bb*S, Bb): per-image mean; bcast (Bb, Bb*S): per-image broadcast."""
    L = Bb * S
    pool = np.zeros((L, Bb), np.float32)
    bcast = np.zeros((Bb, L), np.float32)
    for b in range(Bb):
        pool[b * S:(b + 1) * S, b] = 1.0 / S
        bcast[b, b * S:(b + 1) * S] = 1.0
    return jnp.asarray(pool), jnp.asarray(bcast)


def _flatten_taps(w, taps):
    """(Cout, Cin, kh, kw) torch-layout conv weight -> (Cout, ntaps*Cin).
    Taps outside the (kh, kw) window get zero columns (how 1x3 / 3x1 convs
    share the 5-tap im2col)."""
    cout, cin, kh, kw = w.shape
    oy, ox = (kh - 1) // 2, (kw - 1) // 2
    out = np.zeros((cout, len(taps) * cin), np.float32)
    for t, (dy, dx) in enumerate(taps):
        ky, kx = dy + oy, dx + ox
        if 0 <= ky < kh and 0 <= kx < kw:
            out[:, t * cin:(t + 1) * cin] = w[:, :, ky, kx]
    return out


def make_conv_bn_params(key, cin, cout, kh, kw):
    """Conv2d + BatchNorm2d (inference) folded into (weight, scale, bias)."""
    ks = jax.random.split(key, 6)
    w = 0.1 * jax.random.normal(ks[0], (cout, cin, kh, kw), jnp.float32)
    conv_b = 0.1 * jax.random.normal(ks[1], (cout,), jnp.float32)
    gamma = 1.0 + 0.1 * jax.random.normal(ks[2], (cout,), jnp.float32)
    beta = 0.1 * jax.random.normal(ks[3], (cout,), jnp.float32)
    r_mean = 0.1 * jax.random.normal(ks[4], (cout,), jnp.float32)
    r_var = 0.5 + jnp.abs(jax.random.normal(ks[5], (cout,), jnp.float32))
    eps = 1e-5
    scale = gamma / jnp.sqrt(r_var + eps)
    bias = (conv_b - r_mean) * scale + beta
    return (np.asarray(w, np.float32), np.asarray(scale, np.float32),
            np.asarray(bias, np.float32))


def _fold(cbn, taps):
    """Flatten a conv weight over `taps` and fold the BN scale into the rows."""
    w, scale, bias = cbn
    wf = _flatten_taps(w, taps) * scale[:, None]
    return wf, bias.reshape(-1, 1)


def make_inception_params(key, in_channels, ch1x1, ch3x3red, ch3x3,
                          ch3x3redX2, ch3x3X2, pool_proj, ratio=16):
    ks = jax.random.split(key, 11)
    total = ch1x1 + 2 * ch3x3 + 2 * ch3x3X2 + pool_proj
    cr = total // ratio

    b1 = make_conv_bn_params(ks[0], in_channels, ch1x1, 1, 1)
    b20 = make_conv_bn_params(ks[1], in_channels, ch3x3red, 1, 1)
    b21 = make_conv_bn_params(ks[2], ch3x3red, ch3x3, 1, 3)
    b22 = make_conv_bn_params(ks[3], ch3x3red, ch3x3, 3, 1)
    b30a = make_conv_bn_params(ks[4], in_channels, ch3x3redX2, 1, 1)
    b30b = make_conv_bn_params(ks[5], ch3x3redX2, ch3x3X2, 3, 3)
    b31 = make_conv_bn_params(ks[6], ch3x3X2, ch3x3X2, 1, 3)
    b32 = make_conv_bn_params(ks[7], ch3x3X2, ch3x3X2, 3, 1)
    b4 = make_conv_bn_params(ks[8], in_channels, pool_proj, 1, 1)
    # SE: Linear(total -> cr, bias=False), Linear(cr -> total, bias=False)
    se_w1 = 0.1 * jax.random.normal(ks[9], (cr, total), jnp.float32)
    se_w2 = 0.1 * jax.random.normal(ks[10], (total, cr), jnp.float32)

    w1, bb1 = _fold(b1, TAP1)
    w20, bb20 = _fold(b20, TAP1)
    w30a, bb30a = _fold(b30a, TAP1)
    w30b, bb30b = _fold(b30b, TAPS9)
    w21, bb21 = _fold(b21, TAPS5)
    w22, bb22 = _fold(b22, TAPS5)
    w31, bb31 = _fold(b31, TAPS5)
    w32, bb32 = _fold(b32, TAPS5)
    w4, bb4 = _fold(b4, TAP1)

    # Fused 1x1 stem: rows [branch1 | branch2_0 | branch3_0a].
    w_stem = np.concatenate([w1, w20, w30a], axis=0)
    b_stem = np.concatenate([bb1, bb20, bb30a], axis=0)

    # Fused TAPS5 block-diagonal matmul: rows [b2_1|b2_2|b3_1|b3_2],
    # columns [im2col5(b2_0) | im2col5(b3_0)].
    k2, k3 = 5 * ch3x3red, 5 * ch3x3X2
    c_b2, c_b3 = 2 * ch3x3, 2 * ch3x3X2
    w_mid = np.zeros((c_b2 + c_b3, k2 + k3), np.float32)
    w_mid[:ch3x3, :k2] = w21
    w_mid[ch3x3:2 * ch3x3, :k2] = w22
    w_mid[c_b2:c_b2 + ch3x3X2, k2:] = w31
    w_mid[c_b2 + ch3x3X2:, k2:] = w32
    b_mid = np.concatenate([bb21, bb22, bb31, bb32], axis=0)

    def mm(a):   # matmul weights -> MATMUL_DTYPE (cast once on the host)
        return jnp.asarray(a, jnp.float32).astype(MATMUL_DTYPE)

    def f32(a):
        return jnp.asarray(a, jnp.float32)

    return {
        "w_stem": mm(w_stem), "b_stem": f32(b_stem),
        "w_b3": mm(w30b), "b_b3": f32(bb30b),
        "w_mid": mm(w_mid), "b_mid": f32(b_mid),
        "w_b4": mm(w4), "b_b4": f32(bb4),
        "se_w1": f32(se_w1), "se_w2": f32(se_w2),
        "dims": dict(ch1x1=ch1x1, ch3x3red=ch3x3red, ch3x3=ch3x3,
                     ch3x3redX2=ch3x3redX2, ch3x3X2=ch3x3X2,
                     pool_proj=pool_proj, c_total=total, c_reduce=cr),
    }


# ---------------------------------------------------------------------------
# Forward pass (NCHW in / NCHW out, matching the PyTorch module).
# ---------------------------------------------------------------------------
_WEIGHT_ORDER = ("w_stem", "b_stem", "w_b3", "b_b3", "w_mid", "b_mid",
                 "w_b4", "b_b4", "se_w1", "se_w2")


def _full_spec(a):
    nd = a.ndim
    return pl.BlockSpec(a.shape, lambda i, _n=nd: (0,) * _n)


def _pick_images_per_step(B, S, max_lanes=4096):
    """Largest divisor of B that keeps >= 2 grid steps (v7x megacore sharding)
    and the per-step lane width Bb*S within a modest VMEM budget."""
    if B <= 2:
        return 1
    cap = max(1, min(B // 2, max_lanes // max(S, 1)))
    for bb in range(cap, 0, -1):
        if B % bb == 0:
            return bb
    return 1


def inception_v3c_forward(x_nchw, params, images_per_step=None):
    dims = params["dims"]
    B, Cin, H, W = x_nchw.shape
    S = H * W
    C_total = dims["c_total"]

    Bb = images_per_step or _pick_images_per_step(B, S)
    assert B % Bb == 0, (B, Bb)
    L = Bb * S
    nsteps = B // Bb

    # NCHW -> (Cin, B*S): batch folded into the lane axis (tiny XLA transpose).
    x = jnp.transpose(x_nchw.reshape(B, Cin, S).astype(jnp.float32),
                      (1, 0, 2)).reshape(Cin, B * S)
    mask = _make_shift_mask(H, W, Bb)
    pool_mat, bcast_mat = _make_se_pool_mats(S, Bb)
    weights = [params[k] for k in _WEIGHT_ORDER]

    kern = functools.partial(
        _inception_se_kernel, H=H, W=W, Bb=Bb,
        c1=dims["ch1x1"], c2r=dims["ch3x3red"], c3r2=dims["ch3x3redX2"],
        c_b2=2 * dims["ch3x3"], c_b3=2 * dims["ch3x3X2"])

    in_specs = ([pl.BlockSpec((Cin, L), lambda i: (0, i)),
                 _full_spec(mask), _full_spec(pool_mat), _full_spec(bcast_mat)]
                + [_full_spec(w) for w in weights])

    out = pl.pallas_call(
        kern,
        grid=(nsteps,),
        in_specs=in_specs,
        out_specs=pl.BlockSpec((C_total, L), lambda i: (0, i)),
        out_shape=jax.ShapeDtypeStruct((C_total, B * S), jnp.float32),
        compiler_params=pltpu.CompilerParams(
            dimension_semantics=("parallel",)),
    )(x, mask, pool_mat, bcast_mat, *weights)

    # (C_total, B*S) -> NCHW (tiny XLA transpose back).
    return jnp.transpose(out.reshape(C_total, B, S),
                         (1, 0, 2)).reshape(B, C_total, H, W)


if __name__ == "__main__":
    # Small shapes consistent with the module:
    B, Cin, H, W = 2, 4, 16, 16
    ch1x1, ch3x3red, ch3x3 = 8, 8, 8
    ch3x3redX2, ch3x3X2, pool_proj = 8, 8, 8
    # total channels = 8 + 2*8 + 2*8 + 8 = 48; SE hidden = 48 // 16 = 3

    key = jax.random.PRNGKey(0)
    kx, kp = jax.random.split(key)
    x = jax.random.normal(kx, (B, Cin, H, W), jnp.float32)
    params = make_inception_params(kp, Cin, ch1x1, ch3x3red, ch3x3,
                                   ch3x3redX2, ch3x3X2, pool_proj)

    fwd = jax.jit(lambda xx: inception_v3c_forward(xx, params))
    out = fwd(x)
    jax.block_until_ready(out)
    assert out.shape == (B, 48, H, W), out.shape
    assert bool(jnp.isfinite(out).all())
    print("KERNEL_OK")
</pallas_src>

<mosaic_0001>
module attributes {stable_mosaic.version = 11 : i64} {
  func.func @_inception_se_kernel(%arg0: i32, %arg1: memref<4x256xf32, #tpu.memory_space<vmem>>, %arg2: memref<16x256xf32, #tpu.memory_space<vmem>>, %arg3: memref<256x1xf32, #tpu.memory_space<vmem>>, %arg4: memref<1x256xf32, #tpu.memory_space<vmem>>, %arg5: memref<24x4xbf16, #tpu.memory_space<vmem>>, %arg6: memref<24x1xf32, #tpu.memory_space<vmem>>, %arg7: memref<8x72xbf16, #tpu.memory_space<vmem>>, %arg8: memref<8x1xf32, #tpu.memory_space<vmem>>, %arg9: memref<32x80xbf16, #tpu.memory_space<vmem>>, %arg10: memref<32x1xf32, #tpu.memory_space<vmem>>, %arg11: memref<8x4xbf16, #tpu.memory_space<vmem>>, %arg12: memref<8x1xf32, #tpu.memory_space<vmem>>, %arg13: memref<3x48xf32, #tpu.memory_space<vmem>>, %arg14: memref<48x3xf32, #tpu.memory_space<vmem>>, %arg15: memref<48x256xf32, #tpu.memory_space<vmem>>) attributes {dimension_semantics = [#tpu.dimension_semantics<parallel>], iteration_bounds = array<i64: 2>, scalar_prefetch = 0 : i64, scratch_operands = 0 : i64, tpu.core_type = #tpu.core_type<tc>, window_params = [{transform_indices = @transform_0, window_bounds = array<i64: 4, 256>}, {pipeline_mode = #tpu.pipeline_mode<synchronous>, transform_indices = @transform_1, window_bounds = array<i64: 16, 256>}, {pipeline_mode = #tpu.pipeline_mode<synchronous>, transform_indices = @transform_2, window_bounds = array<i64: 256, 1>}, {pipeline_mode = #tpu.pipeline_mode<synchronous>, transform_indices = @transform_3, window_bounds = array<i64: 1, 256>}, {pipeline_mode = #tpu.pipeline_mode<synchronous>, transform_indices = @transform_4, window_bounds = array<i64: 24, 4>}, {pipeline_mode = #tpu.pipeline_mode<synchronous>, transform_indices = @transform_5, window_bounds = array<i64: 24, 1>}, {pipeline_mode = #tpu.pipeline_mode<synchronous>, transform_indices = @transform_6, window_bounds = array<i64: 8, 72>}, {pipeline_mode = #tpu.pipeline_mode<synchronous>, transform_indices = @transform_7, window_bounds = array<i64: 8, 1>}, {pipeline_mode = #tpu.pipeline_mode<synchronous>, transform_indices = @transform_8, window_bounds = array<i64: 32, 80>}, {pipeline_mode = #tpu.pipeline_mode<synchronous>, transform_indices = @transform_9, window_bounds = array<i64: 32, 1>}, {pipeline_mode = #tpu.pipeline_mode<synchronous>, transform_indices = @transform_10, window_bounds = array<i64: 8, 4>}, {pipeline_mode = #tpu.pipeline_mode<synchronous>, transform_indices = @transform_11, window_bounds = array<i64: 8, 1>}, {pipeline_mode = #tpu.pipeline_mode<synchronous>, transform_indices = @transform_12, window_bounds = array<i64: 3, 48>}, {pipeline_mode = #tpu.pipeline_mode<synchronous>, transform_indices = @transform_13, window_bounds = array<i64: 48, 3>}, {transform_indices = @transform_14, window_bounds = array<i64: 48, 256>}]} {
    %c0 = arith.constant 0 : index
    %c0_0 = arith.constant 0 : index
    %0 = vector.load %arg1[%c0, %c0_0] : memref<4x256xf32, #tpu.memory_space<vmem>>, vector<4x256xf32>
    %c0_1 = arith.constant 0 : index
    %c0_2 = arith.constant 0 : index
    %1 = vector.load %arg2[%c0_1, %c0_2] : memref<16x256xf32, #tpu.memory_space<vmem>>, vector<16x256xf32>
    %c0_3 = arith.constant 0 : index
    %c0_4 = arith.constant 0 : index
    %2 = vector.load %arg5[%c0_3, %c0_4] : memref<24x4xbf16, #tpu.memory_space<vmem>>, vector<24x4xbf16>
    %3 = arith.truncf %0 : vector<4x256xf32> to vector<4x256xbf16>
    %cst = arith.constant dense<0.000000e+00> : vector<24x256xf32>
    %4 = tpu.matmul %2, %3, %cst {dimension_numbers = #tpu.dot_dimension_numbers<[1], [0], [0], [1], [0, 0, 1, 1], [], []>} : vector<24x4xbf16>, vector<4x256xbf16>, vector<24x256xf32> -> vector<24x256xf32>
    %c0_5 = arith.constant 0 : index
    %c0_6 = arith.constant 0 : index
    %5 = vector.load %arg6[%c0_5, %c0_6] : memref<24x1xf32, #tpu.memory_space<vmem>>, vector<24x1xf32>
    %6 = vector.broadcast %5 : vector<24x1xf32> to vector<24x256xf32>
    %7 = arith.addf %4, %6 : vector<24x256xf32>
    %cst_7 = arith.constant 0.000000e+00 : f32
    %8 = vector.broadcast %cst_7 : f32 to vector<24x256xf32>
    %9 = arith.maximumf %7, %8 : vector<24x256xf32>
    %10 = vector.extract_strided_slice %9 {offsets = [0, 0], sizes = [8, 256], strides = [1, 1]} : vector<24x256xf32> to vector<8x256xf32>
    %c0_8 = arith.constant 0 : index
    %c0_9 = arith.constant 0 : index
    %11 = vector.load %arg15[%c0_8, %c0_9] : memref<48x256xf32, #tpu.memory_space<vmem>>, vector<8x256xf32>
    tpu.vector_store %arg15[%c0_8, %c0_9], %10 {strides = array<i32>} : memref<48x256xf32, #tpu.memory_space<vmem>>, vector<8x256xf32>,
    %12 = vector.extract_strided_slice %9 {offsets = [8, 0], sizes = [8, 256], strides = [1, 1]} : vector<24x256xf32> to vector<8x256xf32>
    %13 = vector.extract_strided_slice %9 {offsets = [16, 0], sizes = [8, 256], strides = [1, 1]} : vector<24x256xf32> to vector<8x256xf32>
    %c17_i32 = arith.constant 17 : i32
    %14 = tpu.dynamic_rotate %13 by %c17_i32 dim 1 : vector<8x256xf32>, i32 -> vector<8x256xf32>
    %15 = vector.extract_strided_slice %1 {offsets = [0, 0], sizes = [1, 256], strides = [1, 1]} : vector<16x256xf32> to vector<1x256xf32>
    %16 = vector.shape_cast %15 : vector<1x256xf32> to vector<256xf32>
    %17 = vector.shape_cast %16 : vector<256xf32> to vector<1x256xf32>
    %18 = vector.broadcast %17 : vector<1x256xf32> to vector<8x256xf32>
    %19 = arith.mulf %14, %18 : vector<8x256xf32>
    %c16_i32 = arith.constant 16 : i32
    %20 = tpu.dynamic_rotate %13 by %c16_i32 dim 1 : vector<8x256xf32>, i32 -> vector<8x256xf32>
    %21 = vector.extract_strided_slice %1 {offsets = [1, 0], sizes = [1, 256], strides = [1, 1]} : vector<16x256xf32> to vector<1x256xf32>
    %22 = vector.shape_cast %21 : vector<1x256xf32> to vector<256xf32>
    %23 = vector.shape_cast %22 : vector<256xf32> to vector<1x256xf32>
    %24 = vector.broadcast %23 : vector<1x256xf32> to vector<8x256xf32>
    %25 = arith.mulf %20, %24 : vector<8x256xf32>
    %c15_i32 = arith.constant 15 : i32
    %26 = tpu.dynamic_rotate %13 by %c15_i32 dim 1 : vector<8x256xf32>, i32 -> vector<8x256xf32>
    %27 = vector.extract_strided_slice %1 {offsets = [2, 0], sizes = [1, 256], strides = [1, 1]} : vector<16x256xf32> to vector<1x256xf32>
    %28 = vector.shape_cast %27 : vector<1x256xf32> to vector<256xf32>
    %29 = vector.shape_cast %28 : vector<256xf32> to vector<1x256xf32>
    %30 = vector.broadcast %29 : vector<1x256xf32> to vector<8x256xf32>
    %31 = arith.mulf %26, %30 : vector<8x256xf32>
    %c1_i32 = arith.constant 1 : i32
    %32 = tpu.dynamic_rotate %13 by %c1_i32 dim 1 : vector<8x256xf32>, i32 -> vector<8x256xf32>
    %33 = vector.extract_strided_slice %1 {offsets = [3, 0], sizes = [1, 256], strides = [1, 1]} : vector<16x256xf32> to vector<1x256xf32>
    %34 = vector.shape_cast %33 : vector<1x256xf32> to vector<256xf32>
    %35 = vector.shape_cast %34 : vector<256xf32> to vector<1x256xf32>
    %36 = vector.broadcast %35 : vector<1x256xf32> to vector<8x256xf32>
    %37 = arith.mulf %32, %36 : vector<8x256xf32>
    %c255_i32 = arith.constant 255 : i32
    %38 = tpu.dynamic_rotate %13 by %c255_i32 dim 1 : vector<8x256xf32>, i32 -> vector<8x256xf32>
    %39 = vector.extract_strided_slice %1 {offsets = [5, 0], sizes = [1, 256], strides = [1, 1]} : vector<16x256xf32> to vector<1x256xf32>
    %40 = vector.shape_cast %39 : vector<1x256xf32> to vector<256xf32>
    %41 = vector.shape_cast %40 : vector<256xf32> to vector<1x256xf32>
    %42 = vector.broadcast %41 : vector<1x256xf32> to vector<8x256xf32>
    %43 = arith.mulf %38, %42 : vector<8x256xf32>
    %c241_i32 = arith.constant 241 : i32
    %44 = tpu.dynamic_rotate %13 by %c241_i32 dim 1 : vector<8x256xf32>, i32 -> vector<8x256xf32>
    %45 = vector.extract_strided_slice %1 {offsets = [6, 0], sizes = [1, 256], strides = [1, 1]} : vector<16x256xf32> to vector<1x256xf32>
    %46 = vector.shape_cast %45 : vector<1x256xf32> to vector<256xf32>
    %47 = vector.shape_cast %46 : vector<256xf32> to vector<1x256xf32>
    %48 = vector.broadcast %47 : vector<1x256xf32> to vector<8x256xf32>
    %49 = arith.mulf %44, %48 : vector<8x256xf32>
    %c240_i32 = arith.constant 240 : i32
    %50 = tpu.dynamic_rotate %13 by %c240_i32 dim 1 : vector<8x256xf32>, i32 -> vector<8x256xf32>
    %51 = vector.extract_strided_slice %1 {offsets = [7, 0], sizes = [1, 256], strides = [1, 1]} : vector<16x256xf32> to vector<1x256xf32>
    %52 = vector.shape_cast %51 : vector<1x256xf32> to vector<256xf32>
    %53 = vector.shape_cast %52 : vector<256xf32> to vector<1x256xf32>
    %54 = vector.broadcast %53 : vector<1x256xf32> to vector<8x256xf32>
    %55 = arith.mulf %50, %54 : vector<8x256xf32>
    %c239_i32 = arith.constant 239 : i32
    %56 = tpu.dynamic_rotate %13 by %c239_i32 dim 1 : vector<8x256xf32>, i32 -> vector<8x256xf32>
    %57 = vector.extract_strided_slice %1 {offsets = [8, 0], sizes = [1, 256], strides = [1, 1]} : vector<16x256xf32> to vector<1x256xf32>
    %58 = vector.shape_cast %57 : vector<1x256xf32> to vector<256xf32>
    %59 = vector.shape_cast %58 : vector<256xf32> to vector<1x256xf32>
    %60 = vector.broadcast %59 : vector<1x256xf32> to vector<8x256xf32>
    %61 = arith.mulf %56, %60 : vector<8x256xf32>
    %62 = tpu.concatenate %19, %25, %31, %37, %13, %43, %49, %55, %61 in 0 : vector<8x256xf32>, vector<8x256xf32>, vector<8x256xf32>, vector<8x256xf32>, vector<8x256xf32>, vector<8x256xf32>, vector<8x256xf32>, vector<8x256xf32>, vector<8x256xf32> -> vector<72x256xf32>
    %c0_10 = arith.constant 0 : index
    %c0_11 = arith.constant 0 : index
    %63 = vector.load %arg7[%c0_10, %c0_11] : memref<8x72xbf16, #tpu.memory_space<vmem>>, vector<8x72xbf16>
    %64 = arith.truncf %62 : vector<72x256xf32> to vector<72x256xbf16>
    %cst_12 = arith.constant dense<0.000000e+00> : vector<8x256xf32>
    %65 = tpu.matmul %63, %64, %cst_12 {dimension_numbers = #tpu.dot_dimension_numbers<[1], [0], [0], [1], [0, 0, 1, 1], [], []>} : vector<8x72xbf16>, vector<72x256xbf16>, vector<8x256xf32> -> vector<8x256xf32>
    %c0_13 = arith.constant 0 : index
    %c0_14 = arith.constant 0 : index
    %66 = vector.load %arg8[%c0_13, %c0_14] : memref<8x1xf32, #tpu.memory_space<vmem>>, vector<8x1xf32>
    %67 = vector.broadcast %66 : vector<8x1xf32> to vector<8x256xf32>
    %68 = arith.addf %65, %67 : vector<8x256xf32>
    %cst_15 = arith.constant 0.000000e+00 : f32
    %69 = vector.broadcast %cst_15 : f32 to vector<8x256xf32>
    %70 = arith.maximumf %68, %69 : vector<8x256xf32>
    %c16_i32_16 = arith.constant 16 : i32
    %71 = tpu.dynamic_rotate %12 by %c16_i32_16 dim 1 : vector<8x256xf32>, i32 -> vector<8x256xf32>
    %72 = vector.extract_strided_slice %1 {offsets = [1, 0], sizes = [1, 256], strides = [1, 1]} : vector<16x256xf32> to vector<1x256xf32>
    %73 = vector.shape_cast %72 : vector<1x256xf32> to vector<256xf32>
    %74 = vector.shape_cast %73 : vector<256xf32> to vector<1x256xf32>
    %75 = vector.broadcast %74 : vector<1x256xf32> to vector<8x256xf32>
    %76 = arith.mulf %71, %75 : vector<8x256xf32>
    %c1_i32_17 = arith.constant 1 : i32
    %77 = tpu.dynamic_rotate %12 by %c1_i32_17 dim 1 : vector<8x256xf32>, i32 -> vector<8x256xf32>
    %78 = vector.extract_strided_slice %1 {offsets = [3, 0], sizes = [1, 256], strides = [1, 1]} : vector<16x256xf32> to vector<1x256xf32>
    %79 = vector.shape_cast %78 : vector<1x256xf32> to vector<256xf32>
    %80 = vector.shape_cast %79 : vector<256xf32> to vector<1x256xf32>
    %81 = vector.broadcast %80 : vector<1x256xf32> to vector<8x256xf32>
    %82 = arith.mulf %77, %81 : vector<8x256xf32>
    %c255_i32_18 = arith.constant 255 : i32
    %83 = tpu.dynamic_rotate %12 by %c255_i32_18 dim 1 : vector<8x256xf32>, i32 -> vector<8x256xf32>
    %84 = vector.extract_strided_slice %1 {offsets = [5, 0], sizes = [1, 256], strides = [1, 1]} : vector<16x256xf32> to vector<1x256xf32>
    %85 = vector.shape_cast %84 : vector<1x256xf32> to vector<256xf32>
    %86 = vector.shape_cast %85 : vector<256xf32> to vector<1x256xf32>
    %87 = vector.broadcast %86 : vector<1x256xf32> to vector<8x256xf32>
    %88 = arith.mulf %83, %87 : vector<8x256xf32>
    %c240_i32_19 = arith.constant 240 : i32
    %89 = tpu.dynamic_rotate %12 by %c240_i32_19 dim 1 : vector<8x256xf32>, i32 -> vector<8x256xf32>
    %90 = vector.extract_strided_slice %1 {offsets = [7, 0], sizes = [1, 256], strides = [1, 1]} : vector<16x256xf32> to vector<1x256xf32>
    %91 = vector.shape_cast %90 : vector<1x256xf32> to vector<256xf32>
    %92 = vector.shape_cast %91 : vector<256xf32> to vector<1x256xf32>
    %93 = vector.broadcast %92 : vector<1x256xf32> to vector<8x256xf32>
    %94 = arith.mulf %89, %93 : vector<8x256xf32>
    %95 = tpu.concatenate %76, %82, %12, %88, %94 in 0 : vector<8x256xf32>, vector<8x256xf32>, vector<8x256xf32>, vector<8x256xf32>, vector<8x256xf32> -> vector<40x256xf32>
    %c16_i32_20 = arith.constant 16 : i32
    %96 = tpu.dynamic_rotate %70 by %c16_i32_20 dim 1 : vector<8x256xf32>, i32 -> vector<8x256xf32>
    %97 = vector.extract_strided_slice %1 {offsets = [1, 0], sizes = [1, 256], strides = [1, 1]} : vector<16x256xf32> to vector<1x256xf32>
    %98 = vector.shape_cast %97 : vector<1x256xf32> to vector<256xf32>
    %99 = vector.shape_cast %98 : vector<256xf32> to vector<1x256xf32>
    %100 = vector.broadcast %99 : vector<1x256xf32> to vector<8x256xf32>
    %101 = arith.mulf %96, %100 : vector<8x256xf32>
    %c1_i32_21 = arith.constant 1 : i32
    %102 = tpu.dynamic_rotate %70 by %c1_i32_21 dim 1 : vector<8x256xf32>, i32 -> vector<8x256xf32>
    %103 = vector.extract_strided_slice %1 {offsets = [3, 0], sizes = [1, 256], strides = [1, 1]} : vector<16x256xf32> to vector<1x256xf32>
    %104 = vector.shape_cast %103 : vector<1x256xf32> to vector<256xf32>
    %105 = vector.shape_cast %104 : vector<256xf32> to vector<1x256xf32>
    %106 = vector.broadcast %105 : vector<1x256xf32> to vector<8x256xf32>
    %107 = arith.mulf %102, %106 : vector<8x256xf32>
    %c255_i32_22 = arith.constant 255 : i32
    %108 = tpu.dynamic_rotate %70 by %c255_i32_22 dim 1 : vector<8x256xf32>, i32 -> vector<8x256xf32>
    %109 = vector.extract_strided_slice %1 {offsets = [5, 0], sizes = [1, 256], strides = [1, 1]} : vector<16x256xf32> to vector<1x256xf32>
    %110 = vector.shape_cast %109 : vector<1x256xf32> to vector<256xf32>
    %111 = vector.shape_cast %110 : vector<256xf32> to vector<1x256xf32>
    %112 = vector.broadcast %111 : vector<1x256xf32> to vector<8x256xf32>
    %113 = arith.mulf %108, %112 : vector<8x256xf32>
    %c240_i32_23 = arith.constant 240 : i32
    %114 = tpu.dynamic_rotate %70 by %c240_i32_23 dim 1 : vector<8x256xf32>, i32 -> vector<8x256xf32>
    %115 = vector.extract_strided_slice %1 {offsets = [7, 0], sizes = [1, 256], strides = [1, 1]} : vector<16x256xf32> to vector<1x256xf32>
    %116 = vector.shape_cast %115 : vector<1x256xf32> to vector<256xf32>
    %117 = vector.shape_cast %116 : vector<256xf32> to vector<1x256xf32>
    %118 = vector.broadcast %117 : vector<1x256xf32> to vector<8x256xf32>
    %119 = arith.mulf %114, %118 : vector<8x256xf32>
    %120 = tpu.concatenate %101, %107, %70, %113, %119 in 0 : vector<8x256xf32>, vector<8x256xf32>, vector<8x256xf32>, vector<8x256xf32>, vector<8x256xf32> -> vector<40x256xf32>
    %121 = tpu.concatenate %95, %120 in 0 : vector<40x256xf32>, vector<40x256xf32> -> vector<80x256xf32>
    %c0_24 = arith.constant 0 : index
    %c0_25 = arith.constant 0 : index
    %122 = vector.load %arg9[%c0_24, %c0_25] : memref<32x80xbf16, #tpu.memory_space<vmem>>, vector<32x80xbf16>
    %123 = arith.truncf %121 : vector<80x256xf32> to vector<80x256xbf16>
    %cst_26 = arith.constant dense<0.000000e+00> : vector<32x256xf32>
    %124 = tpu.matmul %122, %123, %cst_26 {dimension_numbers = #tpu.dot_dimension_numbers<[1], [0], [0], [1], [0, 0, 1, 1], [], []>} : vector<32x80xbf16>, vector<80x256xbf16>, vector<32x256xf32> -> vector<32x256xf32>
    %c0_27 = arith.constant 0 : index
    %c0_28 = arith.constant 0 : index
    %125 = vector.load %arg10[%c0_27, %c0_28] : memref<32x1xf32, #tpu.memory_space<vmem>>, vector<32x1xf32>
    %126 = vector.broadcast %125 : vector<32x1xf32> to vector<32x256xf32>
    %127 = arith.addf %124, %126 : vector<32x256xf32>
    %cst_29 = arith.constant 0.000000e+00 : f32
    %128 = vector.broadcast %cst_29 : f32 to vector<32x256xf32>
    %129 = arith.maximumf %127, %128 : vector<32x256xf32>
    %c8 = arith.constant 8 : index
    %c0_30 = arith.constant 0 : index
    %130 = vector.load %arg15[%c8, %c0_30] : memref<48x256xf32, #tpu.memory_space<vmem>>, vector<32x256xf32>
    tpu.vector_store %arg15[%c8, %c0_30], %129 {strides = array<i32>} : memref<48x256xf32, #tpu.memory_space<vmem>>, vector<32x256xf32>,
    %c1_i32_31 = arith.constant 1 : i32
    %131 = tpu.dynamic_rotate %0 by %c1_i32_31 dim 1 : vector<4x256xf32>, i32 -> vector<4x256xf32>
    %132 = vector.extract_strided_slice %1 {offsets = [3, 0], sizes = [1, 256], strides = [1, 1]} : vector<16x256xf32> to vector<1x256xf32>
    %133 = vector.shape_cast %132 : vector<1x256xf32> to vector<256xf32>
    %cst_32 = arith.constant 5.000000e-01 : f32
    %134 = vector.broadcast %cst_32 : f32 to vector<256xf32>
    %135 = arith.cmpf ogt, %133, %134 : vector<256xf32>
    %cst_33 = arith.constant -1.000000e+30 : f32
    %136 = vector.shape_cast %135 : vector<256xi1> to vector<1x256xi1>
    %137 = vector.broadcast %136 : vector<1x256xi1> to vector<4x256xi1>
    %138 = vector.broadcast %cst_33 : f32 to vector<4x256xf32>
    %139 = arith.select %137, %131, %138 : vector<4x256xi1>, vector<4x256xf32>
    %140 = arith.maximumf %0, %139 : vector<4x256xf32>
    %c255_i32_34 = arith.constant 255 : i32
    %141 = tpu.dynamic_rotate %0 by %c255_i32_34 dim 1 : vector<4x256xf32>, i32 -> vector<4x256xf32>
    %142 = vector.extract_strided_slice %1 {offsets = [5, 0], sizes = [1, 256], strides = [1, 1]} : vector<16x256xf32> to vector<1x256xf32>
    %143 = vector.shape_cast %142 : vector<1x256xf32> to vector<256xf32>
    %cst_35 = arith.constant 5.000000e-01 : f32
    %144 = vector.broadcast %cst_35 : f32 to vector<256xf32>
    %145 = arith.cmpf ogt, %143, %144 : vector<256xf32>
    %cst_36 = arith.constant -1.000000e+30 : f32
    %146 = vector.shape_cast %145 : vector<256xi1> to vector<1x256xi1>
    %147 = vector.broadcast %146 : vector<1x256xi1> to vector<4x256xi1>
    %148 = vector.broadcast %cst_36 : f32 to vector<4x256xf32>
    %149 = arith.select %147, %141, %148 : vector<4x256xi1>, vector<4x256xf32>
    %150 = arith.maximumf %140, %149 : vector<4x256xf32>
    %c16_i32_37 = arith.constant 16 : i32
    %151 = tpu.dynamic_rotate %150 by %c16_i32_37 dim 1 : vector<4x256xf32>, i32 -> vector<4x256xf32>
    %152 = vector.extract_strided_slice %1 {offsets = [1, 0], sizes = [1, 256], strides = [1, 1]} : vector<16x256xf32> to vector<1x256xf32>
    %153 = vector.shape_cast %152 : vector<1x256xf32> to vector<256xf32>
    %cst_38 = arith.constant 5.000000e-01 : f32
    %154 = vector.broadcast %cst_38 : f32 to vector<256xf32>
    %155 = arith.cmpf ogt, %153, %154 : vector<256xf32>
    %cst_39 = arith.constant -1.000000e+30 : f32
    %156 = vector.shape_cast %155 : vector<256xi1> to vector<1x256xi1>
    %157 = vector.broadcast %156 : vector<1x256xi1> to vector<4x256xi1>
    %158 = vector.broadcast %cst_39 : f32 to vector<4x256xf32>
    %159 = arith.select %157, %151, %158 : vector<4x256xi1>, vector<4x256xf32>
    %160 = arith.maximumf %150, %159 : vector<4x256xf32>
    %c240_i32_40 = arith.constant 240 : i32
    %161 = tpu.dynamic_rotate %150 by %c240_i32_40 dim 1 : vector<4x256xf32>, i32 -> vector<4x256xf32>
    %162 = vector.extract_strided_slice %1 {offsets = [7, 0], sizes = [1, 256], strides = [1, 1]} : vector<16x256xf32> to vector<1x256xf32>
    %163 = vector.shape_cast %162 : vector<1x256xf32> to vector<256xf32>
    %cst_41 = arith.constant 5.000000e-01 : f32
    %164 = vector.broadcast %cst_41 : f32 to vector<256xf32>
    %165 = arith.cmpf ogt, %163, %164 : vector<256xf32>
    %cst_42 = arith.constant -1.000000e+30 : f32
    %166 = vector.shape_cast %165 : vector<256xi1> to vector<1x256xi1>
    %167 = vector.broadcast %166 : vector<1x256xi1> to vector<4x256xi1>
    %168 = vector.broadcast %cst_42 : f32 to vector<4x256xf32>
    %169 = arith.select %167, %161, %168 : vector<4x256xi1>, vector<4x256xf32>
    %170 = arith.maximumf %160, %169 : vector<4x256xf32>
    %c0_43 = arith.constant 0 : index
    %c0_44 = arith.constant 0 : index
    %171 = vector.load %arg11[%c0_43, %c0_44] : memref<8x4xbf16, #tpu.memory_space<vmem>>, vector<8x4xbf16>
    %172 = arith.truncf %170 : vector<4x256xf32> to vector<4x256xbf16>
    %cst_45 = arith.constant dense<0.000000e+00> : vector<8x256xf32>
    %173 = tpu.matmul %171, %172, %cst_45 {dimension_numbers = #tpu.dot_dimension_numbers<[1], [0], [0], [1], [0, 0, 1, 1], [], []>} : vector<8x4xbf16>, vector<4x256xbf16>, vector<8x256xf32> -> vector<8x256xf32>
    %c0_46 = arith.constant 0 : index
    %c0_47 = arith.constant 0 : index
    %174 = vector.load %arg12[%c0_46, %c0_47] : memref<8x1xf32, #tpu.memory_space<vmem>>, vector<8x1xf32>
    %175 = vector.broadcast %174 : vector<8x1xf32> to vector<8x256xf32>
    %176 = arith.addf %173, %175 : vector<8x256xf32>
    %cst_48 = arith.constant 0.000000e+00 : f32
    %177 = vector.broadcast %cst_48 : f32 to vector<8x256xf32>
    %178 = arith.maximumf %176, %177 : vector<8x256xf32>
    %c40 = arith.constant 40 : index
    %c0_49 = arith.constant 0 : index
    %179 = vector.load %arg15[%c40, %c0_49] : memref<48x256xf32, #tpu.memory_space<vmem>>, vector<8x256xf32>
    tpu.vector_store %arg15[%c40, %c0_49], %178 {strides = array<i32>} : memref<48x256xf32, #tpu.memory_space<vmem>>, vector<8x256xf32>,
    %c0_50 = arith.constant 0 : index
    %c0_51 = arith.constant 0 : index
    %180 = vector.load %arg15[%c0_50, %c0_51] : memref<48x256xf32, #tpu.memory_space<vmem>>, vector<48x256xf32>
    %c0_52 = arith.constant 0 : index
    %c0_53 = arith.constant 0 : index
    %181 = vector.load %arg3[%c0_52, %c0_53] : memref<256x1xf32, #tpu.memory_space<vmem>>, vector<256x1xf32>
    %cst_54 = arith.constant dense<0.000000e+00> : vector<48x1xf32>
    %182 = tpu.matmul %180, %181, %cst_54 {dimension_numbers = #tpu.dot_dimension_numbers<[1], [0], [0], [1], [0, 0, 1, 1], [], []>} : vector<48x256xf32>, vector<256x1xf32>, vector<48x1xf32> -> vector<48x1xf32>
    %c0_55 = arith.constant 0 : index
    %c0_56 = arith.constant 0 : index
    %183 = vector.load %arg13[%c0_55, %c0_56] : memref<3x48xf32, #tpu.memory_space<vmem>>, vector<3x48xf32>
    %cst_57 = arith.constant dense<0.000000e+00> : vector<3x1xf32>
    %184 = tpu.matmul %183, %182, %cst_57 {dimension_numbers = #tpu.dot_dimension_numbers<[1], [0], [0], [1], [0, 0, 1, 1], [], []>} : vector<3x48xf32>, vector<48x1xf32>, vector<3x1xf32> -> vector<3x1xf32>
    %cst_58 = arith.constant 0.000000e+00 : f32
    %185 = vector.broadcast %cst_58 : f32 to vector<3x1xf32>
    %186 = arith.maximumf %184, %185 : vector<3x1xf32>
    %c0_59 = arith.constant 0 : index
    %c0_60 = arith.constant 0 : index
    %187 = vector.load %arg14[%c0_59, %c0_60] : memref<48x3xf32, #tpu.memory_space<vmem>>, vector<48x3xf32>
    %cst_61 = arith.constant dense<0.000000e+00> : vector<48x1xf32>
    %188 = tpu.matmul %187, %186, %cst_61 {dimension_numbers = #tpu.dot_dimension_numbers<[1], [0], [0], [1], [0, 0, 1, 1], [], []>} : vector<48x3xf32>, vector<3x1xf32>, vector<48x1xf32> -> vector<48x1xf32>
    %189 = arith.negf %188 : vector<48x1xf32>
    %190 = math.exp %189 : vector<48x1xf32>
    %cst_62 = arith.constant 1.000000e+00 : f32
    %191 = vector.broadcast %cst_62 : f32 to vector<48x1xf32>
    %192 = arith.addf %191, %190 : vector<48x1xf32>
    %193 = arith.divf %191, %192 : vector<48x1xf32>
    %c0_63 = arith.constant 0 : index
    %c0_64 = arith.constant 0 : index
    %194 = vector.load %arg4[%c0_63, %c0_64] : memref<1x256xf32, #tpu.memory_space<vmem>>, vector<1x256xf32>
    %cst_65 = arith.constant dense<0.000000e+00> : vector<48x256xf32>
    %195 = tpu.matmul %193, %194, %cst_65 {dimension_numbers = #tpu.dot_dimension_numbers<[1], [0], [0], [1], [0, 0, 1, 1], [], []>} : vector<48x1xf32>, vector<1x256xf32>, vector<48x256xf32> -> vector<48x256xf32>
    %196 = arith.mulf %180, %195 : vector<48x256xf32>
    %c0_66 = arith.constant 0 : index
    %c0_67 = arith.constant 0 : index
    %197 = vector.load %arg15[%c0_66, %c0_67] : memref<48x256xf32, #tpu.memory_space<vmem>>, vector<48x256xf32>
    tpu.vector_store %arg15[%c0_66, %c0_67], %196 {strides = array<i32>} : memref<48x256xf32, #tpu.memory_space<vmem>>, vector<48x256xf32>,
    return
  }
  func.func @transform_0(%arg0: i32) -> (i32, i32) {
    %c0_i32 = arith.constant 0 : i32
    %c0_i32_0 = arith.constant 0 : i32
    return %c0_i32, %arg0 : i32, i32
  }
  func.func @transform_1(%arg0: i32) -> (i32, i32) {
    %c0_i32 = arith.constant 0 : i32
    %c0_i32_0 = arith.constant 0 : i32
    %c0_i32_1 = arith.constant 0 : i32
    return %c0_i32, %c0_i32_0 : i32, i32
  }
  func.func @transform_2(%arg0: i32) -> (i32, i32) {
    %c0_i32 = arith.constant 0 : i32
    %c0_i32_0 = arith.constant 0 : i32
    %c0_i32_1 = arith.constant 0 : i32
    return %c0_i32, %c0_i32_0 : i32, i32
  }
  func.func @transform_3(%arg0: i32) -> (i32, i32) {
    %c0_i32 = arith.constant 0 : i32
    %c0_i32_0 = arith.constant 0 : i32
    %c0_i32_1 = arith.constant 0 : i32
    return %c0_i32, %c0_i32_0 : i32, i32
  }
  func.func @transform_4(%arg0: i32) -> (i32, i32) {
    %c0_i32 = arith.constant 0 : i32
    %c0_i32_0 = arith.constant 0 : i32
    %c0_i32_1 = arith.constant 0 : i32
    return %c0_i32, %c0_i32_0 : i32, i32
  }
  func.func @transform_5(%arg0: i32) -> (i32, i32) {
    %c0_i32 = arith.constant 0 : i32
    %c0_i32_0 = arith.constant 0 : i32
    %c0_i32_1 = arith.constant 0 : i32
    return %c0_i32, %c0_i32_0 : i32, i32
  }
  func.func @transform_6(%arg0: i32) -> (i32, i32) {
    %c0_i32 = arith.constant 0 : i32
    %c0_i32_0 = arith.constant 0 : i32
    %c0_i32_1 = arith.constant 0 : i32
    return %c0_i32, %c0_i32_0 : i32, i32
  }
  func.func @transform_7(%arg0: i32) -> (i32, i32) {
    %c0_i32 = arith.constant 0 : i32
    %c0_i32_0 = arith.constant 0 : i32
    %c0_i32_1 = arith.constant 0 : i32
    return %c0_i32, %c0_i32_0 : i32, i32
  }
  func.func @transform_8(%arg0: i32) -> (i32, i32) {
    %c0_i32 = arith.constant 0 : i32
    %c0_i32_0 = arith.constant 0 : i32
    %c0_i32_1 = arith.constant 0 : i32
    return %c0_i32, %c0_i32_0 : i32, i32
  }
  func.func @transform_9(%arg0: i32) -> (i32, i32) {
    %c0_i32 = arith.constant 0 : i32
    %c0_i32_0 = arith.constant 0 : i32
    %c0_i32_1 = arith.constant 0 : i32
    return %c0_i32, %c0_i32_0 : i32, i32
  }
  func.func @transform_10(%arg0: i32) -> (i32, i32) {
    %c0_i32 = arith.constant 0 : i32
    %c0_i32_0 = arith.constant 0 : i32
    %c0_i32_1 = arith.constant 0 : i32
    return %c0_i32, %c0_i32_0 : i32, i32
  }
  func.func @transform_11(%arg0: i32) -> (i32, i32) {
    %c0_i32 = arith.constant 0 : i32
    %c0_i32_0 = arith.constant 0 : i32
    %c0_i32_1 = arith.constant 0 : i32
    return %c0_i32, %c0_i32_0 : i32, i32
  }
  func.func @transform_12(%arg0: i32) -> (i32, i32) {
    %c0_i32 = arith.constant 0 : i32
    %c0_i32_0 = arith.constant 0 : i32
    %c0_i32_1 = arith.constant 0 : i32
    return %c0_i32, %c0_i32_0 : i32, i32
  }
  func.func @transform_13(%arg0: i32) -> (i32, i32) {
    %c0_i32 = arith.constant 0 : i32
    %c0_i32_0 = arith.constant 0 : i32
    %c0_i32_1 = arith.constant 0 : i32
    return %c0_i32, %c0_i32_0 : i32, i32
  }
  func.func @transform_14(%arg0: i32) -> (i32, i32) {
    %c0_i32 = arith.constant 0 : i32
    %c0_i32_0 = arith.constant 0 : i32
    return %c0_i32, %arg0 : i32, i32
  }
}

</mosaic_0001>

<bundles_post_ra>
// kernel: _lambda_.1
= control target key start
LH: loop header
LB: loop body
LE: loop exit
PB: predicated region body
PF: predicated region fallthrough
CT: control target
= control target key end

     0   :  { %s2262_s29 = smov 0   ;;  %s2264_s30 = smov 0   ;;  %s3000_s0 = inlined_call_operand.vmem [shape: f32[4,512], index: 0, kind: input, shape index: {}]   ;;  %s3001_s1 = inlined_call_operand.vmem [shape: f32[16,256], index: 1, kind: input, shape index: {}]   ;;  %s3002_s2 = inlined_call_operand.vmem [shape: f32[256,1], index: 2, kind: input, shape index: {}]   ;;  %s3003_s3 = inlined_call_operand.vmem [shape: f32[1,256], index: 3, kind: input, shape index: {}]   ;;  %s3004_s4 = inlined_call_operand.vmem [shape: bf16[24,4], index: 4, kind: input, shape index: {}]   ;;  %s3005_s5 = inlined_call_operand.vmem [shape: f32[24,1], index: 5, kind: input, shape index: {}]   ;;  %s3006_s6 = inlined_call_operand.vmem [shape: bf16[8,72], index: 6, kind: input, shape index: {}]   ;;  %s3007_s7 = inlined_call_operand.vmem [shape: f32[8,1], index: 7, kind: input, shape index: {}]   ;;  %s3008_s8 = inlined_call_operand.vmem [shape: bf16[32,80], index: 8, kind: input, shape index: {}]   ;;  %s3009_s9 = inlined_call_operand.vmem [shape: f32[32,1], index: 9, kind: input, shape index: {}]   ;;  %s3010_s10 = inlined_call_operand.vmem [shape: bf16[8,4], index: 10, kind: input, shape index: {}]   ;;  %s3011_s11 = inlined_call_operand.vmem [shape: f32[8,1], index: 11, kind: input, shape index: {}]   ;;  %s3012_s12 = inlined_call_operand.vmem [shape: f32[3,48], index: 12, kind: input, shape index: {}]   ;;  %s3013_s13 = inlined_call_operand.vmem [shape: f32[48,3], index: 13, kind: input, shape index: {}]   ;;  %s3014_s14 = inlined_call_operand.vmem [shape: f32[48,512], index: 14, kind: output, shape index: {}]  }
   0x1   :  { %s2266_s15 = smov 0  }
   0x2 LB: > { %s2275_s16 = sadd.s32 4294967295, %s2173_s15   ;;  %s2277_s17 = sadd.s32 1, %s2173_s15   ;;  %s2173_s15 = sphi %s2266_s15, %s3018_s15   ;;  %s2169_s30 = sphi %s2264_s30, %s3017_s30   ;;  %s2165_s29 = sphi %s2262_s29, %s3016_s29  }
   0x3   : > { %s327_s18 = ssub.s32 %s2173_s15, %s2277_s17  ;;  %s330_s19 = sadd.s32 1, %s2169_s30 }
   0x4   : > { %p328_p0 = scmp.eq.s32.totalorder %s327_s18, 0  ;;  %p340_p1 = scmp.ne.s32.totalorder %s2169_s30, %s2165_s29 }
   0x5   : > { %p341_p2 = scmp.eq.s32.totalorder %s2275_s16, 1  ;;  %p1909_p3 = scmp.ge.s32.totalorder %s2173_s15, 1 }
   0x6   : > { %s2285_s20 = scalar_select %p328_p0, %s2169_s30, %s330_s19  }
   0x7   : > { %p2287_p4 = por %p341_p2, %p340_p1  ;;  %p413_p5 = scmp.lt.s32.totalorder %s2173_s15, 3 }
   0x9   : > { %p414_p6 = pnand %p1909_p3, %p413_p5 }
   0xa   : > { %s1910_s22 = sshll.u32 (!%p414_p6), %s2275_s16, 1  ;;  %v2175_v0 = vmov (!%p414_p6), 0   ;;  %v481_v1 = vld [vmem:[%s3005_s5 + $0x10] sm:$0xff] (!%p414_p6)  ;;  %vm512_vm0 = vcmask (!%p414_p6), 1041408   ;;  %v2123_v7 = vld [vmem:[%s3004_s4] sm:$0xff] (!%p414_p6)   ;;  %vm505_vm1 = vcmask (!%p414_p6), 31744   ;;  %v582_v24 = vlaneseq (!%p414_p6) }
   0xb   : > { %417 = sbr.rel (%p414_p6) target bundleno = 1916 (0x77c), region = 76  ;;  %p459_p7 = scmp.lt.s32.totalorder (!%p414_p6), %s1910_s22, 3  ;;  %551 = vmatprep.mubr.bf16.mxu0 (!%p414_p6), %v2175_v0  ;;  %2120 = vset.pattern.permute.xlu0 (!%p414_p6), %v2175_v0  ;;  %v2124_v8 = vld [vmem:[%s3004_s4 + $0x8] ss:$0 sps:$4 sm:$0xff] (!%p414_p6)   ;;  %v727_v23 = vld [vmem:[%s3007_s7] sm:$0xff] (!%p414_p6)  ;;  %vm737_vm10 = vcmask (!%p414_p6), 1043456  }
   0xc   : > { %2121 = vset.pattern.permute.xlu1 (!%p414_p6), %v2175_v0  ;;  %776 = vmatprep.mubr.bf16.mxu1 (!%p414_p6), %v2175_v0  ;;  %s2176_s23 = smov (!%p414_p6), 16   ;;  %s2177_s24 = smov (!%p414_p6), 17   ;;  %v480_v22 = vld [vmem:[%s3005_s5 + $0x8] sm:$0xff] (!%p414_p6)  ;;  %v2368_v27 = vshrl.u32 (!%p414_p6), %v582_v24, 7  ;;  %v2370_v28 = vand.u32 (!%p414_p6), 127, %v582_v24  ;;  %v2378_v32 = vld [vmem:[%s3001_s1] sm:$0xff] (!%p414_p6) }
   0xd   : > { %494 = vperm.xlu0 (!%p414_p6), %2120, %v481_v1   ;;  %s2179_s26 = smov (!%p414_p6), 1   ;;  %s2180_s27 = smov (!%p414_p6), 127   ;;  %v2383_v33 = vld [vmem:[%s3001_s1 + $0x8] sm:$0xff] (!%p414_p6)  ;;  %vm733_vm11 = vcmask (!%p414_p6), 588800   ;;  %vm981_vm12 = vcmp.gt.f32.partialorder (!%p414_p6), %v2378_v32, 0.5  ;;  %vm1025_vm14 = vcmask (!%p414_p6), 1041409  }
   0xe   : > { %s2182_s15 = smov (!%p414_p6), 112   ;;  %s2183_s18 = smov (!%p414_p6), 111   ;;  %v2373_v30 = vsub.s32 (!%p414_p6), 1, %v2368_v27  ;;  %vm601_vm2 = vcmp.lt.s32.totalorder (!%p414_p6), %v2370_v28, 16  ;;  %v2387_v34 = vsub.s32 (!%p414_p6), 0, %v2368_v27  ;;  %v640_v35 = vsub.s32 (!%p414_p6), 3, %v2368_v27 }
   0xf   : > { %v623_v36 = vsub.s32 (!%p414_p6), 2, %v2368_v27  ;;  %v657_v40 = vsub.s32 (!%p414_p6), 5, %v2368_v27  ;;  %vm618_vm3 = vcmp.lt.s32.totalorder (!%p414_p6), %v2370_v28, 15  ;;  %vm584_vm4 = vcmp.lt.s32.totalorder (!%p414_p6), %v2370_v28, 17 }
  0x10   : > { %v2393_v37 = vrot.slane (!%p414_p6), %v2378_v32, %v2373_v30  ;;  %v2398_v41 = vrot.slane (!%p414_p6), %v2383_v33, %v2373_v30  ;;  %v590_v44 = vrot.slane (!%p414_p6), %v2378_v32, %v2387_v34  ;;  %vm635_vm5 = vcmp.lt.s32.totalorder (!%p414_p6), %v2370_v28, 1 }
  0x11   : > { %v2410_v45 = vrot.slane (!%p414_p6), %v2383_v33, %v640_v35  ;;  %v594_v46 = vrot.slane (!%p414_p6), %v2383_v33, %v2387_v34  ;;  %v628_v47 = vrot.slane (!%p414_p6), %v2383_v33, %v623_v36  ;;  %v2416_v48 = vrot.slane (!%p414_p6), %v2378_v32, %v640_v35 }
  0x12   : > { %s3020_s22 = smov (!%p459_p7, %s1910_s22), 3  ;;  %vm652_vm6 = vcmp.lt.s32.totalorder %v2370_v28, 127  ;;  %v2421_v52 = vrot.slane %v2383_v33, %v657_v40  ;;  %v624_v62 = vrot.slane %v2378_v32, %v623_v36  ;;  %vm669_vm7 = vcmp.lt.s32.totalorder %v2370_v28, 113 }
  0x13   : > { %s1911_s25 = sshll.u32 %s3020_s22, 2  ;;  %vm686_vm8 = vcmp.lt.s32.totalorder %v2370_v28, 112  ;;  %vm703_vm9 = vcmp.lt.s32.totalorder %v2370_v28, 111  ;;  %vm982_vm13 = vcmp.gt.f32.partialorder %v2383_v33, 0.5  ;;  %vm1027_vm15 = vcmask 1045509   ;;  %v1286_v28 = vld [vmem:[%s3002_s2 + $0x10] sm:$0xff] }
  0x14   : > { %s462_s28 = scalar_lea.vmem %s3000_s0, %s1911_s25  ;;  %s2178_s25 = smov 15  }
  0x15   : > { %v2302_v2 = vld [vmem:[%s462_s28] sm:$0xff]  ;;  %s2181_s28 = smov 113  }
  0x16   : > { %v475_v3 = vcombine.high %v2302_v2, %v2302_v2  ;;  %v477_v4 = vpack.c.bf16 %v2302_v2, %v2302_v2 }
  0x18   : > { %v478_v5 = vpack.c.bf16 %v475_v3, %v475_v3  ;;  %v514_v6 = vsel %vm512_vm0, %v477_v4, 0 }
  0x1a   : > { %1914 = vmatprep.subr.msk.bf16.mxu0 %vm512_vm0, %v478_v5 }
  0x1b   : > { %520 = vmatpush1.bf16.msra.mxu0 %v514_v6 }
  0x1e   : > { %1915 = vmatmul.mubr.msk.bf16.vlgmr.msra.gmra.mrb[0].mxu0 %vm505_vm1, %v2123_v7 }
  0x1f   : > { %561 = vmatprep.mubr.bf16.mxu0 %v2175_v0 }
  0x26   : > { %1916 = vmatmul.mubr.msk.bf16.gmra.mrb[4].mxu0 %vm505_vm1, %v2124_v8  ;;  %v2436_v8 = vrot.slane %v2378_v32, %v657_v40 }
  0x27   : > { %938 = vmatprep.mubr.bf16.mxu0 %v2175_v0 }
  0x8c   : > { %v495_v13 = vpop.permute.xlu0 %494 }
  0xf1   : > { %v2320_v9 = vpop.f32.mrb[0].mxu0 }
  0xf2   : > { %v2322_v10 = vpop.f32.mrb[1].mxu0 }
  0xf3   : > { %v2324_v11 = vpop.f32.mrb[2].mxu0 }
  0xf4   : > { %v2326_v12 = vpop.f32.mrb[3].mxu0 }
  0xf9   : > { %v563_v14 = vpop.f32.mrb[4].mxu0 }
  0xfa   : > { %v564_v15 = vadd.f32 %v563_v14, %v495_v13  ;;  %v565_v16 = vpop.f32.mrb[5].mxu0  ;;  %v674_v14 = vsub.s32 6, %v2368_v27 }
  0xfb   : > { %v567_v17 = vpop.f32.mrb[6].mxu0  ;;  %v566_v19 = vadd.f32 %v565_v16, %v495_v13 }
  0xfc   : > { %v2328_v18 = vmax.f32 %v564_v15, 0.0  ;;  %v568_v20 = vpop.f32.mrb[7].mxu0 }
  0xfd   : > { %v2333_v21 = vmax.f32 %v566_v19, 0.0  ;;  %v691_v19 = vsub.s32 7, %v2368_v27 }
  0xfe   : > { %597 = vrot.lane.b32.xlu1 %v2328_v18, %s2176_s23  ;;  %578 = vrot.lane.b32.xlu0 %v2328_v18, %s2177_s24 }
  0xff   : > { %v2455_v35 = vrot.slane %v2378_v32, %v691_v19  ;;  %v2458_v36 = vrot.slane %v2383_v33, %v691_v19 }
 0x102   : > { %614 = vrot.lane.b32.xlu1 %v2328_v18, %s2178_s25  ;;  %599 = vrot.lane.b32.xlu0 %v2333_v21, %s2176_s23 }
 0x106   : > { %631 = vrot.lane.b32.xlu1 %v2328_v18, %s2179_s26  ;;  %616 = vrot.lane.b32.xlu0 %v2333_v21, %s2178_s25 }
 0x10a   : > { %580 = vrot.lane.b32.xlu1 %v2333_v21, %s2177_s24  ;;  %633 = vrot.lane.b32.xlu0 %v2333_v21, %s2179_s26 }
 0x10e   : > { %648 = vrot.lane.b32.xlu1 %v2328_v18, %s2180_s27  ;;  %650 = vrot.lane.b32.xlu0 %v2333_v21, %s2180_s27 }
 0x112   : > { %665 = vrot.lane.b32.xlu1 %v2328_v18, %s2181_s28  ;;  %667 = vrot.lane.b32.xlu0 %v2333_v21, %s2181_s28 }
 0x116   : > { %682 = vrot.lane.b32.xlu1 %v2328_v18, %s2182_s15  ;;  %684 = vrot.lane.b32.xlu0 %v2333_v21, %s2182_s15 }
 0x11a   : > { %699 = vrot.lane.b32.xlu1 %v2328_v18, %s2183_s18  ;;  %701 = vrot.lane.b32.xlu0 %v2333_v21, %s2183_s18 }
 0x11e   : > { %489 = vperm.xlu1 %2121, %v480_v22   ;;  %975 = vrot.lane.b32.xlu0 %v2302_v2, %s2179_s26 }
 0x122   : > { %730 = vperm.xlu0 %2120, %v727_v23   ;;  %977 = vrot.lane.b32.xlu1 %v475_v3, %s2179_s26 }
 0x126   : > { %1040 = vrot.lane.b32.xlu1 %v2302_v2, %s2180_s27  ;;  %1042 = vrot.lane.b32.xlu0 %v475_v3, %s2180_s27 }
 0x170   : > { %v598_v25 = vpop.permute.xlu1 %597  ;;  %v579_v26 = vpop.permute.xlu0 %578 }
 0x174   : > { %v615_v29 = vpop.permute.xlu1 %614  ;;  %v600_v31 = vpop.permute.xlu0 %599 }
 0x175   : > { %v602_v42 = vsel %vm601_vm2, %v598_v25, %v600_v31  ;;  %v603_v43 = vsel %vm601_vm2, %v600_v31, %v598_v25  ;;  %v675_v25 = vrot.slane %v2378_v32, %v674_v14  ;;  %v469_v31 = vld [vmem:[%s3001_s1 + $0x10] sm:$0xff] }
 0x176   : > { %v612_v49 = vmul.f32 %v2393_v37, %v603_v43  ;;  %v613_v53 = vmul.f32 %v2398_v41, %v602_v42 }
 0x178   : > { %v632_v38 = vpop.permute.xlu1 %631  ;;  %v617_v39 = vpop.permute.xlu0 %616 }
 0x179   : > { %v619_v54 = vsel %vm618_vm3, %v615_v29, %v617_v39  ;;  %v620_v63 = vsel %vm618_vm3, %v617_v39, %v615_v29  ;;  %vm1030_vm3 = vcmask 1042434  }
 0x17a   : > { %v630_v1 = vmul.f32 %v628_v47, %v619_v54  ;;  %v629_v20 = vmul.f32 %v624_v62, %v620_v63 }
 0x17c   : > { %v581_v50 = vpop.permute.xlu1 %580  ;;  %v634_v51 = vpop.permute.xlu0 %633 }
 0x17d   : > { %v585_v55 = vsel %vm584_vm4, %v579_v26, %v581_v50  ;;  %v586_v56 = vsel %vm584_vm4, %v581_v50, %v579_v26  ;;  %v636_v57 = vsel %vm635_vm5, %v632_v38, %v634_v51  ;;  %v637_v59 = vsel %vm635_vm5, %v634_v51, %v632_v38  ;;  %v470_v38 = vld [vmem:[%s3001_s1 + $0x18] sm:$0xff] }
 0x17e   : > { %v595_v58 = vmul.f32 %v590_v44, %v586_v56  ;;  %v647_v60 = vmul.f32 %v2410_v45, %v636_v57  ;;  %v596_v61 = vmul.f32 %v594_v46, %v585_v55  ;;  %v646_v7 = vmul.f32 %v2416_v48, %v637_v59 }
 0x17f   : > { %v679_v26 = vrot.slane %v2383_v33, %v674_v14  ;;  %vm1032_vm4 = vcmask 1046534  }
 0x180   : > { %v649_v3 = vpop.permute.xlu1 %648  ;;  %v651_v4 = vpop.permute.xlu0 %650  ;;  %v718_v5 = vpack.c.bf16 %v613_v53, %v596_v61  ;;  %v717_v6 = vpack.c.bf16 %v612_v49, %v595_v58  ;;  %v720_v17 = vpack.c.bf16 %v647_v60, %v630_v1  ;;  %v719_v29 = vpack.c.bf16 %v646_v7, %v629_v20 }
 0x181   : > { %v654_v13 = vsel %vm652_vm6, %v651_v4, %v649_v3  ;;  %v653_v15 = vsel %vm652_vm6, %v649_v3, %v651_v4  ;;  %v713_v49 = vrot.slane %v470_v38, %v2387_v34  ;;  %v716_v3 = vld [vmem:[%s3006_s6] sm:$0xf] }
 0x182   : > { %v664_v16 = vmul.f32 %v2421_v52, %v654_v13  ;;  %744 = vmatprep.subr.bf16.mxu1 %v718_v5  ;;  %v663_v24 = vmul.f32 %v2436_v8, %v653_v15 }
 0x183   : > { %745 = vmatpush1.bf16.msra.mxu1 %v717_v6 }
 0x184   : > { %v666_v22 = vpop.permute.xlu1 %665  ;;  %746 = vmatprep.subr.bf16.mxu1 %v720_v17  ;;  %v668_v23 = vpop.permute.xlu0 %667  ;;  %v722_v27 = vpack.c.bf16 %v664_v16, %v2333_v21  ;;  %v709_v21 = vrot.slane %v469_v31, %v2387_v34  ;;  %v721_v47 = vpack.c.bf16 %v663_v24, %v2328_v18 }
 0x185   : > { %v670_v39 = vsel %vm669_vm7, %v666_v22, %v668_v23  ;;  %v671_v40 = vsel %vm669_vm7, %v668_v23, %v666_v22  ;;  %vm1034_vm7 = vcmask 1043459  }
 0x186   : > { %v680_v50 = vmul.f32 %v675_v25, %v670_v39  ;;  %v681_v51 = vmul.f32 %v679_v26, %v671_v40 }
 0x187   : > { %747 = vmatpush1.bf16.msra.mxu1 %v719_v29 }
 0x188   : > { %v683_v42 = vpop.permute.xlu1 %682  ;;  %748 = vmatprep.subr.bf16.mxu1 %v722_v27  ;;  %v685_v43 = vpop.permute.xlu0 %684 }
 0x189   : > { %v687_v44 = vsel %vm686_vm8, %v683_v42, %v685_v43  ;;  %v688_v46 = vsel %vm686_vm8, %v685_v43, %v683_v42 }
 0x18a   : > { %v697_v53 = vmul.f32 %v2455_v35, %v687_v44  ;;  %v698_v54 = vmul.f32 %v2458_v36, %v688_v46 }
 0x18b   : > { %749 = vmatpush1.bf16.msra.mxu1 %v721_v47 }
 0x18c   : > { %v700_v55 = vpop.permute.xlu1 %699  ;;  %v702_v56 = vpop.permute.xlu0 %701  ;;  %v724_v57 = vpack.c.bf16 %v698_v54, %v681_v51  ;;  %v723_v58 = vpack.c.bf16 %v697_v53, %v680_v50 }
 0x18d   : > { %v704_v59 = vsel %vm703_vm9, %v700_v55, %v702_v56  ;;  %v705_v60 = vsel %vm703_vm9, %v702_v56, %v700_v55  ;;  %vm1036_vm9 = vcmask 1047559  }
 0x18e   : > { %v714_v18 = vmul.f32 %v709_v21, %v704_v59  ;;  %v715_v61 = vmul.f32 %v713_v49, %v705_v60  ;;  %750 = vmatprep.subr.bf16.mxu1 %v724_v57 }
 0x18f   : > { %751 = vmatpush1.bf16.msra.mxu1 %v723_v58 }
 0x190   : > { %v725_v62 = vpack.c.bf16 %v714_v18, %v714_v18  ;;  %v726_v63 = vpack.c.bf16 %v715_v61, %v715_v61  ;;  %v976_v4 = vpop.permute.xlu0 %975 }
 0x192   : > { %1917 = vmatprep.subr.msk.bf16.mxu1 %vm737_vm10, %v726_v63  ;;  %v739_v1 = vsel %vm737_vm10, %v725_v62, 0  ;;  %vm1657_vm10 = vcmask 7168  }
 0x193   : > { %753 = vmatpush1.bf16.msra.mxu1 %v739_v1 }
 0x196   : > { %1918 = vmatmul.mubr.msk.bf16.vlgmr.msra.gmra.mrb[0].mxu1 %vm733_vm11, %v716_v3 }
 0x197   : > { %1259 = vmatprep.mubr.bf16.mxu1 %v2175_v0 }
 0x19d   : > { %v490_v5 = vpop.permute.xlu1 %489 }
 0x19e   : > { %v558_v6 = vadd.f32 %v2324_v11, %v490_v5  ;;  %v560_v7 = vadd.f32 %v2326_v12, %v490_v5 }
 0x1a0   : > { %v2483_v13 = vmax.f32 %v558_v6, 0.0  ;;  %v2485_v14 = vmax.f32 %v560_v7, 0.0 }
 0x1a1   : > { %v2489_v15 = vpop.permute.xlu0 %730  ;;  %v978_v16 = vpop.permute.xlu1 %977 }
 0x1a2   : > { %787 = vrot.lane.b32.xlu1 %v2483_v13, %s2176_s23  ;;  %789 = vrot.lane.b32.xlu0 %v2485_v14, %s2176_s23  ;;  %v979_v11 = vsel %vm635_vm5, %v976_v4, %v978_v16  ;;  %v980_v12 = vsel %vm635_vm5, %v978_v16, %v976_v4 }
 0x1a3   : > { %v989_v17 = vrot.slane %v980_v12, 5  ;;  %v990_v19 = vrot.slane %v979_v11, 5  ;;  %v991_v20 = vrot.slane %v980_v12, 6  ;;  %v992_v22 = vrot.slane %v979_v11, 6 }
 0x1a4   : > { %v993_v23 = vrot.slane %v980_v12, 7  ;;  %v994_v24 = vrot.slane %v979_v11, 7  ;;  %v1009_v25 = vsel %vm981_vm12, %v980_v12, -1e+30  ;;  %v1010_v26 = vsel %vm982_vm13, %v979_v11, -1e+30 }
 0x1a5   : > { %v1003_v29 = vsel %vm981_vm12, %v989_v17, -1e+30  ;;  %v1004_v31 = vsel %vm982_vm13, %v990_v19, -1e+30  ;;  %v1005_v27 = vsel %vm981_vm12, %v991_v20, -1e+30  ;;  %v1022_v38 = vcombine.low %v1009_v25, %v1010_v26  ;;  %v1041_v39 = vpop.permute.xlu1 %1040  ;;  %v1043_v40 = vpop.permute.xlu0 %1042 }
 0x1a6   : > { %795 = vrot.lane.b32.xlu1 %v2483_v13, %s2179_s26  ;;  %797 = vrot.lane.b32.xlu0 %v2485_v14, %s2179_s26  ;;  %v1006_v42 = vsel %vm982_vm13, %v992_v22, -1e+30  ;;  %v1007_v43 = vsel %vm981_vm12, %v993_v23, -1e+30  ;;  %v1008_v21 = vsel %vm982_vm13, %v994_v24, -1e+30  ;;  %v1019_v44 = vcombine.low %v1003_v29, %v1004_v31 }
 0x1a7   : > { %v1020_v46 = vcombine.low %v1005_v27, %v1006_v42  ;;  %v1021_v47 = vcombine.low %v1007_v43, %v1008_v21  ;;  %v1044_v49 = vsel %vm652_vm6, %v1041_v39, %v1043_v40  ;;  %v1045_v50 = vsel %vm652_vm6, %v1043_v40, %v1041_v39 }
 0x1a8   : > { %v1023_v51 = vrot.slane %v1019_v44, 3  ;;  %v1048_v53 = vrot.slane %v1044_v49, 3  ;;  %v1049_v54 = vrot.slane %v1045_v50, 3  ;;  %v1050_v55 = vrot.slane %v1044_v49, 4 }
 0x1a9   : > { %v1024_v56 = vrot.slane %v1020_v46, 2  ;;  %v1029_v57 = vrot.slane %v1021_v47, 1  ;;  %v1051_v58 = vrot.slane %v1045_v50, 4  ;;  %v1052_v59 = vrot.slane %v1044_v49, 5 }
 0x1aa   : > { %803 = vrot.lane.b32.xlu1 %v2483_v13, %s2180_s27  ;;  %805 = vrot.lane.b32.xlu0 %v2485_v14, %s2180_s27  ;;  %v1053_v60 = vrot.slane %v1045_v50, 5  ;;  %v1054_v18 = vrot.slane %v1044_v49, 6  ;;  %v1055_v61 = vrot.slane %v1045_v50, 6  ;;  %v1064_v62 = vsel %vm981_vm12, %v1048_v53, -1e+30 }
 0x1ab   : > { %v1026_v63 = vsel %vm1025_vm14, %v1024_v56, %v1023_v51  ;;  %v1065_v1 = vsel %vm982_vm13, %v1049_v54, -1e+30  ;;  %v1066_v3 = vsel %vm981_vm12, %v1050_v55, -1e+30  ;;  %v1067_v4 = vsel %vm982_vm13, %v1051_v58, -1e+30 }
 0x1ac   : > { %v1028_v5 = vsel %vm1027_vm15, %v1024_v56, %v1026_v63  ;;  %v1068_v6 = vsel %vm981_vm12, %v1052_v59, -1e+30  ;;  %v1069_v7 = vsel %vm982_vm13, %v1053_v60, -1e+30  ;;  %v1070_v16 = vsel %vm981_vm12, %v1054_v18, -1e+30 }
 0x1ad   : > { %v1031_v11 = vsel %vm1030_vm3, %v1029_v57, %v1028_v5  ;;  %v1071_v12 = vsel %vm982_vm13, %v1055_v61, -1e+30  ;;  %v1080_v17 = vcombine.high %v1064_v62, %v1065_v1  ;;  %v1081_v19 = vcombine.high %v1066_v3, %v1067_v4 }
 0x1ae   : > { %811 = vrot.lane.b32.xlu1 %v2483_v13, %s2182_s15  ;;  %813 = vrot.lane.b32.xlu0 %v2485_v14, %s2182_s15  ;;  %v1033_v20 = vsel %vm1032_vm4, %v1029_v57, %v1031_v11  ;;  %v1082_v22 = vcombine.high %v1068_v6, %v1069_v7  ;;  %v1083_v23 = vcombine.high %v1070_v16, %v1071_v12 }
 0x1af   : > { %v1035_v24 = vsel %vm1034_vm7, %v1022_v38, %v1033_v20  ;;  %v1084_v25 = vrot.slane %v1080_v17, 1 }
 0x1b0   : > { %v1087_v26 = vrot.slane %v1082_v22, 7  ;;  %v1037_v29 = vsel %vm1036_vm9, %v1022_v38, %v1035_v24  ;;  %v1090_v27 = vrot.slane %v1083_v23, 6  ;;  %v867_v23 = vld [vmem:[%s3009_s9 + $0x10] sm:$0xff]  ;;  %v868_v24 = vld [vmem:[%s3009_s9 + $0x18] sm:$0xff] }
 0x1b1   : > { %v1085_v31 = vsel %vm1025_vm14, %v1081_v19, %v1084_v25  ;;  %v1039_v42 = vmax.f32 %v2302_v2, %v1037_v29  ;;  %v1212_v25 = vld [vmem:[%s3011_s11] sm:$0xff] }
 0x1b2   : > { %v1086_v39 = vsel %vm1027_vm15, %v1081_v19, %v1085_v31 }
 0x1b3   : > { %v1088_v40 = vsel %vm1030_vm3, %v1087_v26, %v1086_v39 }
 0x1b4   : > { %v1089_v43 = vsel %vm1032_vm4, %v1087_v26, %v1088_v40 }
 0x1b5   : > { %v1091_v21 = vsel %vm1034_vm7, %v1090_v27, %v1089_v43 }
 0x1b6   : > { %v1092_v44 = vsel %vm1036_vm9, %v1090_v27, %v1091_v21 }
 0x1b7   : > { %v2560_v46 = vmax.f32 %v1039_v42, %v1092_v44 }
 0x1b9   : > { %1098 = vrot.lane.b32.xlu1 %v2560_v46, %s2176_s23  ;;  %v1096_v38 = vcombine.high %v2560_v46, %v2560_v46 }
 0x1bb   : > { %1100 = vrot.lane.b32.xlu0 %v1096_v38, %s2176_s23 }
 0x214   : > { %v788_v47 = vpop.permute.xlu1 %787  ;;  %v790_v49 = vpop.permute.xlu0 %789 }
 0x215   : > { %v791_v2 = vsel %vm601_vm2, %v788_v47, %v790_v49  ;;  %v792_v50 = vsel %vm601_vm2, %v790_v49, %v788_v47 }
 0x216   : > { %v793_v56 = vmul.f32 %v792_v50, %v2393_v37  ;;  %v794_v57 = vmul.f32 %v791_v2, %v2398_v41 }
 0x218   : > { %v796_v51 = vpop.permute.xlu1 %795  ;;  %v798_v53 = vpop.permute.xlu0 %797 }
 0x219   : > { %v799_v54 = vsel %vm635_vm5, %v796_v51, %v798_v53  ;;  %v800_v55 = vsel %vm635_vm5, %v798_v53, %v796_v51 }
 0x21a   : > { %v801_v58 = vmul.f32 %v800_v55, %v2416_v48  ;;  %v802_v59 = vmul.f32 %v799_v54, %v2410_v45 }
 0x21c   : > { %v855_v60 = vpack.c.bf16 %v801_v58, %v793_v56  ;;  %v804_v18 = vpop.permute.xlu1 %803  ;;  %v806_v61 = vpop.permute.xlu0 %805  ;;  %v856_v62 = vpack.c.bf16 %v802_v59, %v794_v57 }
 0x21d   : > { %v807_v63 = vsel %vm652_vm6, %v804_v18, %v806_v61  ;;  %v808_v1 = vsel %vm652_vm6, %v806_v61, %v804_v18 }
 0x21e   : > { %v809_v3 = vmul.f32 %v807_v63, %v2436_v8  ;;  %v810_v4 = vmul.f32 %v808_v1, %v2421_v52  ;;  %906 = vmatprep.subr.bf16.mxu0 %v856_v62 }
 0x21f   : > { %907 = vmatpush1.bf16.msra.mxu0 %v855_v60 }
 0x220   : > { %v857_v5 = vpack.c.bf16 %v809_v3, %v2483_v13  ;;  %v858_v6 = vpack.c.bf16 %v810_v4, %v2485_v14  ;;  %v479_v13 = vld [vmem:[%s3005_s5] sm:$0xff]  ;;  %v812_v26 = vpop.permute.xlu1 %811  ;;  %v814_v29 = vpop.permute.xlu0 %813 }
 0x221   : > { %v865_v14 = vld [vmem:[%s3009_s9] sm:$0xff]  ;;  %v816_v47 = vsel %vm686_vm8, %v814_v29, %v812_v26 }
 0x222   : > { %908 = vmatprep.subr.bf16.mxu0 %v858_v6  ;;  %v818_v57 = vmul.f32 %v816_v47, %v2458_v36 }
 0x223   : > { %909 = vmatpush1.bf16.msra.mxu0 %v857_v5 }
 0x22b   : > { %v1099_v31 = vpop.permute.xlu1 %1098 }
 0x22d   : > { %v1101_v27 = vpop.permute.xlu0 %1100 }
 0x22e   : > { %v1102_v39 = vsel %vm601_vm2, %v1099_v31, %v1101_v27  ;;  %v1103_v40 = vsel %vm601_vm2, %v1101_v27, %v1099_v31 }
 0x22f   : > { %v1106_v42 = vrot.slane %v1103_v40, 7  ;;  %v1107_v43 = vrot.slane %v1102_v39, 7  ;;  %v1108_v49 = vrot.slane %v1103_v40, 1  ;;  %v1109_v2 = vrot.slane %v1102_v39, 1 }
 0x230   : > { %v1122_v53 = vsel %vm981_vm12, %v1103_v40, -1e+30  ;;  %v1123_v54 = vsel %vm982_vm13, %v1102_v39, -1e+30  ;;  %v1110_v4 = vrot.slane %v1103_v40, 2  ;;  %v1111_v5 = vrot.slane %v1102_v39, 2 }
 0x231   : > { %v1120_v21 = vsel %vm981_vm12, %v1106_v42, -1e+30  ;;  %v1121_v44 = vsel %vm982_vm13, %v1107_v43, -1e+30  ;;  %v1124_v60 = vsel %vm981_vm12, %v1108_v49, -1e+30  ;;  %v1137_v63 = vcombine.low %v1122_v53, %v1123_v54 }
 0x232   : > { %v1136_v50 = vcombine.low %v1120_v21, %v1121_v44  ;;  %v1125_v18 = vsel %vm982_vm13, %v1109_v2, -1e+30  ;;  %v1300_v42 = vld [vmem:[%s3002_s2 + $0x80] sm:$0xff]  ;;  %v1301_v43 = vld [vmem:[%s3002_s2 + $0x88] sm:$0xff] }
 0x233   : > { %v1284_v49 = vld [vmem:[%s3002_s2] sm:$0xff]  ;;  %v1285_v2 = vld [vmem:[%s3002_s2 + $0x8] sm:$0xff] }
 0x234   : > { %v1140_v1 = vrot.slane %v1136_v50, 1 }
 0x269   : > { %v778_v7 = vpop.f32.mrb[0].mxu1 }
 0x26a   : > { %v779_v16 = vadd.f32 %v778_v7, %v2489_v15  ;;  %v780_v11 = vpop.f32.mrb[1].mxu1 }
 0x26b   : > { %v781_v12 = vadd.f32 %v780_v11, %v2489_v15  ;;  %v782_v17 = vpop.f32.mrb[2].mxu1  ;;  %v866_v15 = vld [vmem:[%s3009_s9 + $0x8] sm:$0xff]  ;;  %v1138_v11 = vcombine.low %v1124_v60, %v1125_v18 }
 0x26c   : > { %v2589_v19 = vmax.f32 %v779_v16, 0.0  ;;  %v783_v20 = vpop.f32.mrb[3].mxu1 }
 0x26d   : > { %v2591_v22 = vmax.f32 %v781_v12, 0.0 }
 0x26e   : > { %819 = vrot.lane.b32.xlu1 %v2589_v19, %s2176_s23 }
 0x26f   : > { %821 = vrot.lane.b32.xlu0 %v2591_v22, %s2176_s23 }
 0x272   : > { %827 = vrot.lane.b32.xlu1 %v2589_v19, %s2179_s26 }
 0x273   : > { %829 = vrot.lane.b32.xlu0 %v2591_v22, %s2179_s26 }
 0x276   : > { %835 = vrot.lane.b32.xlu1 %v2589_v19, %s2180_s27 }
 0x277   : > { %837 = vrot.lane.b32.xlu0 %v2591_v22, %s2180_s27 }
 0x27a   : > { %843 = vrot.lane.b32.xlu1 %v2589_v19, %s2182_s15 }
 0x27b   : > { %845 = vrot.lane.b32.xlu0 %v2591_v22, %s2182_s15 }
 0x27e   : > { %1151 = vrot.lane.b32.xlu1 %v2560_v46, %s2182_s15 }
 0x27f   : > { %1153 = vrot.lane.b32.xlu0 %v1096_v38, %s2182_s15  ;;  %v815_v38 = vsel %vm686_vm8, %v812_v26, %v814_v29  ;;  %v1143_v26 = vrot.slane %v1138_v11, 7  ;;  %s455_s15 = sand.u32 1, %s2165_s29   ;;  %s1951_s29 = sshll.u32 (%p2287_p4), %s2275_s16, 4 }
 0x280   : > { %v817_v56 = vmul.f32 %v815_v38, %v2455_v35  ;;  %s2083_s22 = smul.u32 96, %s455_s15  ;;  %s1815_s25 = scalar_lea.vmem (%p2287_p4), %s3014_s14, %s1951_s29 }
 0x282   : > { %484 = vperm.xlu1 %2121, %v479_v13   ;;  %s2938_s23 = scalar_lea.vmem [#allocation2], %s2083_s22 }
 0x283   : > { %871 = vperm.xlu0 %2120, %v865_v14   ;;  %v1126_v14 = vsel %vm981_vm12, %v1110_v4, -1e+30 }
 0x286   : > { %876 = vperm.xlu1 %2121, %v866_v15   ;;  %v1127_v15 = vsel %vm982_vm13, %v1111_v5, -1e+30 }
 0x287   : > { %881 = vperm.xlu0 %2120, %v867_v23  }
 0x28a   : > { %886 = vperm.xlu1 %2121, %v868_v24  }
 0x28b   : > { %1215 = vperm.xlu0 %2120, %v1212_v25  }
 0x2e0   : > { %v820_v51 = vpop.permute.xlu1 %819 }
 0x2e1   : > { %v822_v55 = vpop.permute.xlu0 %821 }
 0x2e2   : > { %v823_v58 = vsel %vm601_vm2, %v820_v51, %v822_v55  ;;  %v824_v59 = vsel %vm601_vm2, %v822_v55, %v820_v51  ;;  %vm899_vm2 = vcmask 654336  }
 0x2e3   : > { %v825_v61 = vmul.f32 %v824_v59, %v2393_v37  ;;  %v826_v62 = vmul.f32 %v823_v58, %v2398_v41  ;;  %v1141_v41 = vsel %vm1025_vm14, %v1137_v63, %v1140_v1  ;;  %v1302_v58 = vld [vmem:[%s3002_s2 + $0x90] sm:$0xff]  ;;  %v1303_v59 = vld [vmem:[%s3002_s2 + $0x98] sm:$0xff] }
 0x2e4   : > { %v828_v3 = vpop.permute.xlu1 %827 }
 0x2e5   : > { %v859_v6 = vpack.c.bf16 %v825_v61, %v817_v56  ;;  %v830_v7 = vpop.permute.xlu0 %829  ;;  %v860_v16 = vpack.c.bf16 %v826_v62, %v818_v57  ;;  %v2125_v56 = vld [vmem:[%s3008_s8] sm:$0xff]   ;;  %v2044_v57 = vpack.c.bf16 %v1285_v2, %v1284_v49 }
 0x2e6   : > { %v831_v12 = vsel %vm635_vm5, %v828_v3, %v830_v7  ;;  %v832_v17 = vsel %vm635_vm5, %v830_v7, %v828_v3  ;;  %v1305_v7 = vld [vmem:[%s3002_s2 + $0xa8] sm:$0xff]  ;;  %v1308_v2 = vld [vmem:[%s3002_s2 + $0xc0] sm:$0xff]  ;;  %vm1493_vm5 = vcmask 23552  }
 0x2e7   : > { %v833_v20 = vmul.f32 %v832_v17, %v2416_v48  ;;  %v834_v37 = vmul.f32 %v831_v12, %v2410_v45  ;;  %910 = vmatprep.subr.bf16.mxu0 %v860_v16  ;;  %v1142_v48 = vsel %vm1027_vm15, %v1137_v63, %v1141_v41  ;;  %v1139_v45 = vcombine.low %v1126_v14, %v1127_v15  ;;  %v1287_v63 = vld [vmem:[%s3002_s2 + $0x18] sm:$0xff] }
 0x2e8   : > { %v836_v13 = vpop.permute.xlu1 %835  ;;  %911 = vmatpush1.bf16.msra.mxu0 %v859_v6  ;;  %v1144_v40 = vsel %vm1030_vm3, %v1143_v26, %v1142_v48  ;;  %v1304_v6 = vld [vmem:[%s3002_s2 + $0xa0] sm:$0xff]  ;;  %v2046_v17 = vpack.c.bf16 %v1303_v59, %v1302_v58  ;;  %v1311_v58 = vld [vmem:[%s3002_s2 + $0xd8] sm:$0xff] }
 0x2e9   : > { %v861_v23 = vpack.c.bf16 %v2589_v19, %v833_v20  ;;  %v838_v24 = vpop.permute.xlu0 %837  ;;  %v862_v25 = vpack.c.bf16 %v2591_v22, %v834_v37  ;;  %v1146_v50 = vrot.slane %v1139_v45, 6  ;;  %v1145_v53 = vsel %vm1032_vm4, %v1143_v26, %v1144_v40  ;;  %v1288_v45 = vld [vmem:[%s3002_s2 + $0x20] sm:$0xff] }
 0x2ea   : > { %v839_v29 = vsel %vm652_vm6, %v836_v13, %v838_v24  ;;  %v840_v31 = vsel %vm652_vm6, %v838_v24, %v836_v13  ;;  %v2048_v24 = vpack.c.bf16 %v1287_v63, %v1286_v28  ;;  %v2050_v48 = vpack.c.bf16 %v1305_v7, %v1304_v6  ;;  %v1295_v63 = vld [vmem:[%s3002_s2 + $0x58] sm:$0xff] }
 0x2eb   : > { %912 = vmatprep.subr.bf16.mxu0 %v862_v25  ;;  %v841_v21 = vmul.f32 %v839_v29, %v2436_v8  ;;  %v842_v44 = vmul.f32 %v840_v31, %v2421_v52  ;;  %v2042_v52 = vpack.c.bf16 %v1301_v43, %v1300_v42  ;;  %v1147_v25 = vsel %vm1034_vm7, %v1146_v50, %v1145_v53  ;;  %v1289_v29 = vld [vmem:[%s3002_s2 + $0x28] sm:$0xff] }
 0x2ec   : > { %v844_v27 = vpop.permute.xlu1 %843  ;;  %913 = vmatpush1.bf16.msra.mxu0 %v861_v23  ;;  %v2052_v33 = vpack.c.bf16 %v1289_v29, %v1288_v45  ;;  %v1148_v42 = vsel %vm1036_vm9, %v1146_v50, %v1147_v25  ;;  %v1309_v50 = vld [vmem:[%s3002_s2 + $0xc8] sm:$0xff]  ;;  %vm1512_vm6 = vcmask 1042432  }
 0x2ed   : > { %v846_v39 = vpop.permute.xlu0 %845 }
 0x2ee   : > { %v847_v19 = vsel %vm686_vm8, %v844_v27, %v846_v39  ;;  %v848_v22 = vsel %vm686_vm8, %v846_v39, %v844_v27  ;;  %v1307_v39 = vld [vmem:[%s3002_s2 + $0xb8] sm:$0xff] }
 0x2ef   : > { %v849_v38 = vmul.f32 %v847_v19, %v2455_v35  ;;  %v850_v47 = vmul.f32 %v848_v22, %v2458_v36  ;;  %v2126_v22 = vld [vmem:[%s3008_s8 + $0x8] sm:$0xff]  }
 0x2f0   : > { %v1152_v51 = vpop.permute.xlu1 %1151 }
 0x2f1   : > { %v863_v54 = vpack.c.bf16 %v849_v38, %v841_v21  ;;  %v1154_v8 = vpop.permute.xlu0 %1153  ;;  %v864_v55 = vpack.c.bf16 %v850_v47, %v842_v44  ;;  %v1290_v38 = vld [vmem:[%s3002_s2 + $0x30] sm:$0xff]  ;;  %v1291_v47 = vld [vmem:[%s3002_s2 + $0x38] sm:$0xff] }
 0x2f2   : > { %v1155_v35 = vsel %vm686_vm8, %v1152_v51, %v1154_v8  ;;  %v1156_v36 = vsel %vm686_vm8, %v1154_v8, %v1152_v51  ;;  %v1150_v51 = vmax.f32 %v2560_v46, %v1148_v42  ;;  %vm1676_vm8 = vcmask 1040384  }
 0x2f3   : > { %v1159_v60 = vrot.slane %v1155_v35, 1  ;;  %v1160_v18 = vrot.slane %v1156_v36, 1  ;;  %v1161_v61 = vrot.slane %v1155_v35, 2  ;;  %v1162_v62 = vrot.slane %v1156_v36, 2  ;;  %914 = vmatprep.subr.bf16.mxu0 %v864_v55 }
 0x2f4   : > { %v1163_v1 = vrot.slane %v1155_v35, 3  ;;  %v1164_v3 = vrot.slane %v1156_v36, 3  ;;  %v1165_v4 = vrot.slane %v1155_v35, 4  ;;  %v1166_v5 = vrot.slane %v1156_v36, 4  ;;  %915 = vmatpush1.bf16.msra.mxu0 %v863_v54  ;;  %v1292_v36 = vld [vmem:[%s3002_s2 + $0x40] sm:$0xff] }
 0x2f5   : > { %v1175_v16 = vsel %vm981_vm12, %v1159_v60, -1e+30  ;;  %v1176_v11 = vsel %vm982_vm13, %v1160_v18, -1e+30  ;;  %v1177_v12 = vsel %vm981_vm12, %v1161_v61, -1e+30  ;;  %2043 = vmatprep.subr.bf16.mxu0 %v2042_v52  ;;  %v2056_v54 = vpack.c.bf16 %v1291_v47, %v1290_v38 }
 0x2f6   : > { %v1178_v20 = vsel %vm982_vm13, %v1162_v62, -1e+30  ;;  %v1179_v37 = vsel %vm981_vm12, %v1163_v1, -1e+30  ;;  %v1180_v41 = vsel %vm982_vm13, %v1164_v3, -1e+30  ;;  %v1191_v13 = vcombine.high %v1175_v16, %v1176_v11 }
 0x2f7   : > { %v1192_v14 = vcombine.high %v1177_v12, %v1178_v20  ;;  %v1193_v15 = vcombine.high %v1179_v37, %v1180_v41  ;;  %1921 = vmatmul.mubr.msk.bf16.vlgmr.msra.gmra.mrb[8].mxu0 %vm899_vm2, %v2125_v56  ;;  %v1181_v31 = vsel %vm981_vm12, %v1165_v4, -1e+30  ;;  %v1182_v27 = vsel %vm982_vm13, %v1166_v5, -1e+30  ;;  %v1293_v56 = vld [vmem:[%s3002_s2 + $0x48] sm:$0xff]  ;;  %v1312_v1 = vld [vmem:[%s3002_s2 + $0xe0] sm:$0xff] }
 0x2f8   : > { %v1195_v23 = vrot.slane %v1191_v13, 3  ;;  %2045 = vmatpush3.bf16.msra.mxu0 %v2044_v57  ;;  %948 = vmatprep.mubr.bf16.mxu0 %v2175_v0  ;;  %v1306_v0 = vld [vmem:[%s3002_s2 + $0xb0] sm:$0xff]  ;;  %v1194_v43 = vcombine.high %v1181_v31, %v1182_v27  ;;  %v2058_v35 = vpack.c.bf16 %v1309_v50, %v1308_v2  ;;  %v2060_v61 = vpack.c.bf16 %v1293_v56, %v1292_v36  ;;  %v1313_v3 = vld [vmem:[%s3002_s2 + $0xe8] sm:$0xff]  ;;  %v1206_v5 = vld [vmem:[%s3010_s10] sm:$0xf] }
 0x2f9   : > { %v1196_v26 = vrot.slane %v1192_v14, 2  ;;  %2047 = vmatprep.subr.bf16.mxu0 %v2046_v17  ;;  %v1199_v19 = vrot.slane %v1193_v15, 1  ;;  %v2054_v44 = vpack.c.bf16 %v1307_v39, %v1306_v0  ;;  %v1310_v57 = vld [vmem:[%s3002_s2 + $0xd0] sm:$0xff]  ;;  %v2066_v7 = vpack.c.bf16 %v1313_v3, %v1312_v1  ;;  %v1296_v16 = vld [vmem:[%s3002_s2 + $0x60] sm:$0xff]  ;;  %v1297_v11 = vld [vmem:[%s3002_s2 + $0x68] sm:$0xff] }
 0x2fa   : > { %v2062_v28 = vpack.c.bf16 %v1311_v58, %v1310_v57  ;;  %v1314_v12 = vld [vmem:[%s3002_s2 + $0xf0] sm:$0xff]  ;;  %v1315_v17 = vld [vmem:[%s3002_s2 + $0xf8] sm:$0xff]  ;;  %v2068_v20 = vpack.c.bf16 %v1297_v11, %v1296_v16 }
 0x2fb   : > { %v1197_v40 = vsel %vm1025_vm14, %v1196_v26, %v1195_v23  ;;  %v2070_v37 = vpack.c.bf16 %v1315_v17, %v1314_v12  ;;  %v1298_v41 = vld [vmem:[%s3002_s2 + $0x70] sm:$0xff]  ;;  %v1299_v13 = vld [vmem:[%s3002_s2 + $0x78] sm:$0xff] }
 0x2fc   : > { %v1198_v32 = vsel %vm1027_vm15, %v1196_v26, %v1197_v40  ;;  %2049 = vmatpush3.bf16.msra.mxu0 %v2048_v24  ;;  %v2072_v14 = vpack.c.bf16 %v1299_v13, %v1298_v41 }
 0x2fd   : > { %v1200_v21 = vsel %vm1030_vm3, %v1199_v19, %v1198_v32  ;;  %2051 = vmatprep.subr.bf16.mxu0 %v2050_v48 }
 0x2fe   : > { %v1201_v49 = vsel %vm1032_vm4, %v1199_v19, %v1200_v21 }
 0x2ff   : > { %1922 = vmatmul.mubr.msk.bf16.gmra.mrb[12].mxu0 %vm899_vm2, %v2126_v22  ;;  %v1202_v53 = vsel %vm1034_vm7, %v1194_v43, %v1201_v49 }
 0x300   : > { %2053 = vmatpush3.bf16.msra.mxu0 %v2052_v33  ;;  %v1203_v8 = vsel %vm1036_vm9, %v1194_v43, %v1202_v53 }
 0x301   : > { %v485_v55 = vpop.permute.xlu1 %484  ;;  %2055 = vmatprep.subr.bf16.mxu0 %v2054_v44  ;;  %v1205_v52 = vmax.f32 %v1150_v51, %v1203_v8 }
 0x302   : > { %v2785_v46 = vadd.f32 %v2322_v10, %v485_v55  ;;  %v1294_v10 = vld [vmem:[%s3002_s2 + $0x50] sm:$0xff]  ;;  %v2833_v15 = vadd.f32 %v2320_v9, %v485_v55  ;;  %v872_v24 = vpop.permute.xlu0 %871 }
 0x303   : > { %v1208_v59 = vcombine.high %v1205_v52, %v1205_v52  ;;  %v1210_v60 = vpack.c.bf16 %v1205_v52, %v1205_v52  ;;  %v2064_v6 = vpack.c.bf16 %v1295_v63, %v1294_v10  ;;  %v2186_v10 = vmov 0.0  }
 0x304   : > { %v571_v18 = vmax.f32 %v2785_v46, 0.0  ;;  %2057 = vmatpush3.bf16.msra.mxu0 %v2056_v54  ;;  %v570_v23 = vmax.f32 %v2833_v15, 0.0 }
 0x305   : > { %v1211_v62 = vpack.c.bf16 %v1208_v59, %v1208_v59  ;;  %2059 = vmatprep.subr.bf16.mxu0 %v2058_v35  ;;  %v1222_v4 = vsel %vm512_vm0, %v1210_v60, 0  ;;  %v877_v31 = vpop.permute.xlu1 %876 }
 0x306   : > { %1380 = vmatprep.mubr.f32.mxu0 %v571_v18  ;;  %v882_v22 = vpop.permute.xlu0 %881 }
 0x307   : > { %1923 = vmatprep.subr.msk.bf16.mxu1 %vm512_vm0, %v1211_v62  ;;  %vm2185_vm0 = vmmov 0  }
 0x308   : > { %1228 = vmatpush1.bf16.msra.mxu1 %v1222_v4  ;;  %2061 = vmatpush3.bf16.msra.mxu0 %v2060_v61 }
 0x309   : > { %2063 = vmatprep.subr.bf16.mxu0 %v2062_v28  ;;  %v887_v38 = vpop.permute.xlu1 %886  ;;  %v2184_v28 = vmov 0.0|0.0  }
 0x30a   : > { %v1216_v8 = vpop.permute.xlu0 %1215  ;;  %2074 = vmatprep.subr.bf16.mxu1 %v2184_v28 }
 0x30b   : > { %1924 = vmatmul.mubr.msk.bf16.vlgmr.msra.gmra.mrb[4].mxu1 %vm505_vm1, %v1206_v5  ;;  %vm1412_vm1 = vcmask 392192  }
 0x30c   : > { %2065 = vmatpush3.bf16.msra.mxu0 %v2064_v6  ;;  %2028 = vmatprep.mubr.msk.f32.mxu1 %vm2185_vm0, %v2186_v10 }
 0x30d   : > { %2067 = vmatprep.subr.bf16.mxu0 %v2066_v7 }
 0x310   : > { %2069 = vmatpush3.bf16.msra.mxu0 %v2068_v20 }
 0x311   : > { %2071 = vmatprep.subr.bf16.mxu0 %v2070_v37 }
 0x314   : > { %2073 = vmatpush3.bf16.msra.mxu0 %v2072_v14 }
 0x317   : > { %1381 = vmatmul.mubr.f32.vlgmr.msra.gmra.mrb[16].mxu0 %v570_v23 }
 0x3ca   : > { %v940_v25 = vpop.f32.mrb[8].mxu0 }
 0x3cb   : > { %v2838_v26 = vadd.f32 %v940_v25, %v872_v24  ;;  %v942_v48 = vpop.f32.mrb[9].mxu0 }
 0x3cc   : > { %v2840_v45 = vadd.f32 %v942_v48, %v872_v24  ;;  %v944_v29 = vpop.f32.mrb[10].mxu0  ;;  %v1411_v48 = vld [vmem:[%s3012_s12] sm:$0x7] }
 0x3cd   : > { %v946_v27 = vpop.f32.mrb[11].mxu0  ;;  %v959_v39 = vmax.f32 %v2838_v26, 0.0  ;;  %v2846_v40 = vadd.f32 %v944_v29, %v877_v31  ;;  %v1487_v29 = vld [vmem:[%s3013_s13] sm:$0xff] }
 0x3ce   : > { %v960_v9 = vmax.f32 %v2840_v45, 0.0  ;;  %v2843_v0 = vadd.f32 %v946_v27, %v877_v31 }
 0x3cf   : > { %v961_v33 = vmax.f32 %v2846_v40, 0.0 }
 0x3d0   : > { %v962_v19 = vmax.f32 %v2843_v0, 0.0  ;;  %1385 = vmatprep.mubr.f32.mxu0 %v960_v9 }
 0x3d1   : > { %1386 = vmatmul.mubr.f32.gmra.mrb[18].mxu0 %v959_v39 }
 0x3d2   : > { %v950_v32 = vpop.f32.mrb[12].mxu0  ;;  %1390 = vmatprep.mubr.f32.mxu0 %v962_v19 }
 0x3d3   : > { %v2856_v42 = vadd.f32 %v950_v32, %v882_v22  ;;  %v952_v43 = vpop.f32.mrb[13].mxu0  ;;  %v1488_v32 = vld [vmem:[%s3013_s13 + $0x8] sm:$0xff] }
 0x3d4   : > { %v2858_v21 = vadd.f32 %v952_v43, %v882_v22  ;;  %v954_v44 = vpop.f32.mrb[14].mxu0  ;;  %v1489_v43 = vld [vmem:[%s3013_s13 + $0x10] sm:$0xff] }
 0x3d5   : > { %v956_v47 = vpop.f32.mrb[15].mxu0  ;;  %1391 = vmatmul.mubr.f32.gmra.mrb[20].mxu0 %v961_v33  ;;  %v963_v50 = vmax.f32 %v2856_v42, 0.0  ;;  %v2866_v51 = vadd.f32 %v954_v44, %v887_v38  ;;  %v1490_v44 = vld [vmem:[%s3013_s13 + $0x18] sm:$0xff] }
 0x3d6   : > { %v964_v49 = vmax.f32 %v2858_v21, 0.0  ;;  %v2863_v2 = vadd.f32 %v956_v47, %v887_v38  ;;  %v1491_v38 = vld [vmem:[%s3013_s13 + $0x20] sm:$0xff]  ;;  %v1492_v47 = vld [vmem:[%s3013_s13 + $0x28] sm:$0xff] }
 0x3d7   : > { %v965_v54 = vmax.f32 %v2866_v51, 0.0 }
 0x3d8   : > { %v966_v53 = vmax.f32 %v2863_v2, 0.0  ;;  %1395 = vmatprep.mubr.f32.mxu0 %v964_v49 }
 0x3d9   : > { %1396 = vmatmul.mubr.f32.gmra.mrb[22].mxu0 %v963_v50 }
 0x3da   : > { %1400 = vmatprep.mubr.f32.mxu0 %v966_v53 }
 0x3dd   : > { %1401 = vmatmul.mubr.f32.gmra.mrb[24].mxu0 %v965_v54 }
 0x3de   : > { %v1261_v55 = vpop.f32.mrb[4].mxu1 }
 0x3df   : > { %v2878_v52 = vadd.f32 %v1261_v55, %v1216_v8  ;;  %v1263_v35 = vpop.f32.mrb[5].mxu1 }
 0x3e0   : > { %v2880_v36 = vadd.f32 %v1263_v35, %v1216_v8  ;;  %v1265_v56 = vpop.f32.mrb[6].mxu1  ;;  %v1647_v8 = vld [vmem:[%s3003_s3] sm:$0x3] }
 0x3e1   : > { %v1266_v57 = vpop.f32.mrb[7].mxu1  ;;  %v1268_v59 = vmax.f32 %v2878_v52, 0.0  ;;  %v1652_v55 = vrot.slane %v1647_v8, %v2387_v34  ;;  %v1656_v35 = vrot.slane %v1647_v8, %v2373_v30 }
 0x3e2   : > { %v1269_v58 = vmax.f32 %v2880_v36, 0.0 }
 0x3e4   : > { %1405 = vmatprep.mubr.f32.mxu0 %v1269_v58 }
 0x3e5   : > { %1406 = vmatmul.mubr.f32.gmra.mrb[26].mxu0 %v1268_v59 }
 0x3ea   : > { %v1984_v60 = vpop.f32.mrb[16].mxu0 }
 0x3eb   : > { %v1985_v61 = vpop.f32.mrb[17].mxu0 }
 0x3ec   : > { %v1986_v62 = vadd.f32 %v1985_v61, %v1984_v60 }
 0x4a4   : > { %v1987_v63 = vpop.f32.mrb[18].mxu0 }
 0x4a5   : > { %v1988_v1 = vpop.f32.mrb[19].mxu0 }
 0x4a6   : > { %v1989_v3 = vadd.f32 %v1988_v1, %v1987_v63 }
 0x4a8   : > { %v2075_v4 = vpack.c.bf16 %v1989_v3, %v1986_v62  ;;  %v1990_v5 = vpop.f32.mrb[20].mxu0 }
 0x4a9   : > { %v1991_v6 = vpop.f32.mrb[21].mxu0 }
 0x4aa   : > { %v1992_v7 = vadd.f32 %v1991_v6, %v1990_v5  ;;  %2076 = vmatpush3.bf16.msra.mxu1 %v2075_v4 }
 0x4ab   : > { %2077 = vmatprep.subr.bf16.mxu1 %v2184_v28 }
 0x4ac   : > { %v1993_v16 = vpop.f32.mrb[22].mxu0 }
 0x4ad   : > { %v1994_v11 = vpop.f32.mrb[23].mxu0 }
 0x4ae   : > { %v1995_v12 = vadd.f32 %v1994_v11, %v1993_v16 }
 0x4b0   : > { %v2078_v17 = vpack.c.bf16 %v1995_v12, %v1992_v7  ;;  %v1996_v20 = vpop.f32.mrb[24].mxu0 }
 0x4b1   : > { %v1997_v37 = vpop.f32.mrb[25].mxu0 }
 0x4b2   : > { %v1998_v41 = vadd.f32 %v1997_v37, %v1996_v20  ;;  %2079 = vmatpush3.bf16.msra.mxu1 %v2078_v17 }
 0x4b3   : > { %2080 = vmatprep.subr.bf16.mxu1 %v2184_v28 }
 0x4b8   : > { %v1999_v13 = vpop.f32.mrb[26].mxu0 }
 0x4b9   : > { %v2000_v14 = vpop.f32.mrb[27].mxu0 }
 0x4ba   : > { %v2001_v24 = vadd.f32 %v2000_v14, %v1999_v13 }
 0x4bc   : > { %v2081_v25 = vpack.c.bf16 %v2001_v24, %v1998_v41 }
 0x4be   : > { %2082 = vmatpush3.bf16.msra.mxu1 %v2081_v25 }
 0x4c1   : > { %2029 = vmatmul.mubr.msk.f32.vlgmr.msra.gmra.mrb[8].mxu1 %vm1412_vm1, %v1411_v48 }
 0x4c2   : > { %2033 = vmatprep.mubr.msk.f32.mxu1 %vm1493_vm5, %v1487_v29 }
 0x594   : > { %v1482_v31 = vpop.f32.mrb[8].mxu1 }
 0x595   : > { %v1486_v27 = vmax.f32 %v1482_v31, 0.0  ;;  %v2030_v22 = vpop.f32.mrb[9].mxu1 }
 0x597   : > { %2031 = vmatprep.subr.msk.mxu1 %vm1512_vm6, %v1486_v27 }
 0x598   : > { %2032 = vmatpush3.msk.msra.mxu1 %vm1512_vm6, %v1486_v27 }
 0x599   : > { %2034 = vmatmul.mubr.msk.f32.vlgmr.msra.gmra.mrb[10].mxu1 %vm1493_vm5, %v1488_v32  ;;  %1939 = vmatprep.subr.msk.mxu1 %vm1676_vm8, %v1656_v35 }
 0x59a   : > { %2036 = vmatprep.mubr.msk.f32.mxu1 %vm1493_vm5, %v1489_v43  ;;  %1940 = vmatpush1.msk.msra.mxu1 %vm1676_vm8, %v1652_v55 }
 0x59d   : > { %2037 = vmatmul.mubr.msk.f32.gmra.mrb[12].mxu1 %vm1493_vm5, %v1490_v44 }
 0x59e   : > { %2039 = vmatprep.mubr.msk.f32.mxu1 %vm1493_vm5, %v1491_v38 }
 0x5a1   : > { %2040 = vmatmul.mubr.msk.f32.gmra.mrb[14].mxu1 %vm1493_vm5, %v1492_v47 }
 0x5a2   : > { %1745 = vmatprep.mubr.f32.mxu1 %v2186_v10 }
 0x66c   : > { %v2035_v56 = vpop.f32.mrb[10].mxu1 }
 0x66d   : > { %v1934_v57 = vmul.f32 -1.442695, %v2035_v56  ;;  %v1582_v60 = vpop.f32.mrb[11].mxu1 }
 0x66e   : > { %v1933_v61 = vmul.f32 -1.442695, %v1582_v60 }
 0x66f   : > { %2127 = vpow2.f32 %v1934_v57 }
 0x670   : > { %2129 = vpow2.f32 %v1933_v61  ;;  %v2038_v62 = vpop.f32.mrb[12].mxu1 }
 0x671   : > { %v1592_v28 = vpop.f32.mrb[13].mxu1  ;;  %v1936_v1 = vmul.f32 -1.442695, %v2038_v62 }
 0x672   : > { %v1935_v63 = vmul.f32 -1.442695, %v1592_v28 }
 0x674   : > { %2131 = vpow2.f32 %v1935_v63  ;;  %v2041_v3 = vpop.f32.mrb[14].mxu1 }
 0x675   : > { %v1602_v4 = vpop.f32.mrb[15].mxu1  ;;  %2133 = vpow2.f32 %v1936_v1  ;;  %v1938_v7 = vmul.f32 -1.442695, %v2041_v3 }
 0x676   : > { %v1937_v5 = vmul.f32 -1.442695, %v1602_v4 }
 0x678   : > { %2135 = vpow2.f32 %v1937_v5 }
 0x679   : > { %v2128_v34 = vpop.eup %2127 }
 0x67a   : > { %v2130_v30 = vpop.eup %2129  ;;  %v1630_v16 = vadd.f32 1.0, %v2128_v34 }
 0x67b   : > { %v1629_v6 = vadd.f32 1.0, %v2130_v30 }
 0x67d   : > { %2137 = vrcp.f32 %v1629_v6 }
 0x67e   : > { %v2132_v11 = vpop.eup %2131  ;;  %2139 = vpow2.f32 %v1938_v7 }
 0x67f   : > { %v1631_v12 = vadd.f32 1.0, %v2132_v11  ;;  %2141 = vrcp.f32 %v1630_v16  ;;  %v2134_v17 = vpop.eup %2133 }
 0x680   : > { %v1632_v37 = vadd.f32 1.0, %v2134_v17 }
 0x681   : > { %2143 = vrcp.f32 %v1631_v12 }
 0x682   : > { %v2136_v20 = vpop.eup %2135  ;;  %2145 = vrcp.f32 %v1632_v37 }
 0x683   : > { %v1633_v13 = vadd.f32 1.0, %v2136_v20 }
 0x685   : > { %2147 = vrcp.f32 %v1633_v13 }
 0x687   : > { %v2138_v41 = vpop.eup %2137 }
 0x688   : > { %1941 = vmatmul.mubr.msk.f32.vlgmr.msra.gmra.mrb[16].mxu1 %vm1657_vm10, %v2138_v41  ;;  %v2140_v14 = vpop.eup %2139 }
 0x689   : > { %1751 = vmatprep.mubr.f32.mxu1 %v2186_v10  ;;  %v2142_v24 = vpop.eup %2141  ;;  %v1634_v48 = vadd.f32 1.0, %v2140_v14 }
 0x68b   : > { %v2144_v25 = vpop.eup %2143  ;;  %2149 = vrcp.f32 %v1634_v48 }
 0x68c   : > { %1942 = vmatmul.mubr.msk.f32.gmra.mrb[18].mxu1 %vm1657_vm10, %v2142_v24  ;;  %v2146_v29 = vpop.eup %2145 }
 0x68d   : > { %1757 = vmatprep.mubr.f32.mxu1 %v2186_v10 }
 0x68f   : > { %v2148_v31 = vpop.eup %2147 }
 0x690   : > { %1943 = vmatmul.mubr.msk.f32.gmra.mrb[20].mxu1 %vm1657_vm10, %v2144_v25 }
 0x691   : > { %1763 = vmatprep.mubr.f32.mxu1 %v2186_v10 }
 0x694   : > { %1944 = vmatmul.mubr.msk.f32.gmra.mrb[22].mxu1 %vm1657_vm10, %v2146_v29 }
 0x695   : > { %1769 = vmatprep.mubr.f32.mxu1 %v2186_v10  ;;  %v2150_v27 = vpop.eup %2149 }
 0x698   : > { %1945 = vmatmul.mubr.msk.f32.gmra.mrb[24].mxu1 %vm1657_vm10, %v2148_v31 }
 0x699   : > { %1775 = vmatprep.mubr.f32.mxu1 %v2186_v10 }
 0x69c   : > { %1946 = vmatmul.mubr.msk.f32.gmra.mrb[26].mxu1 %vm1657_vm10, %v2150_v27 }
 0x75b   : > { %v1747_v22 = vpop.f32.mrb[16].mxu1 }
 0x75c   : > { %v1782_v32 = vmul.f32 %v1747_v22, %v570_v23  ;;  %v1749_v43 = vpop.f32.mrb[17].mxu1 }
 0x75d   : > { %v1783_v44 = vmul.f32 %v1749_v43, %v571_v18 }
 0x75e   : > { %1794 = vst [vmem:[%s2938_s23] sm:$0xff] %v1782_v32 }
 0x75f   : > { %1795 = vst [vmem:[%s2938_s23 + $0x8] sm:$0xff] %v1783_v44  ;;  %v1753_v10 = vpop.f32.mrb[18].mxu1 }
 0x760   : > { %v1784_v15 = vmul.f32 %v1753_v10, %v959_v39  ;;  %v1755_v23 = vpop.f32.mrb[19].mxu1 }
 0x761   : > { %v1785_v46 = vmul.f32 %v1755_v23, %v960_v9 }
 0x762   : > { %1796 = vst [vmem:[%s2938_s23 + $0x10] sm:$0xff] %v1784_v15 }
 0x763   : > { %1797 = vst [vmem:[%s2938_s23 + $0x18] sm:$0xff] %v1785_v46  ;;  %v1759_v18 = vpop.f32.mrb[20].mxu1 }
 0x764   : > { %v1786_v38 = vmul.f32 %v1759_v18, %v961_v33  ;;  %v1761_v47 = vpop.f32.mrb[21].mxu1 }
 0x765   : > { %v1787_v8 = vmul.f32 %v1761_v47, %v962_v19 }
 0x766   : > { %1798 = vst [vmem:[%s2938_s23 + $0x20] sm:$0xff] %v1786_v38  ;;  %v1830_v2 = vld [vmem:[%s2938_s23 + $0x8] sm:$0xff] (%p2287_p4) }
 0x767   : > { %1799 = vst [vmem:[%s2938_s23 + $0x28] sm:$0xff] %v1787_v8  ;;  %v1765_v26 = vpop.f32.mrb[22].mxu1  ;;  %1831 = vst [vmem:[%s1815_s25 + $0x8] sm:$0xff] (%p2287_p4), %v1830_v2 }
 0x768   : > { %v1788_v45 = vmul.f32 %v1765_v26, %v963_v50  ;;  %v1767_v9 = vpop.f32.mrb[23].mxu1 }
 0x769   : > { %v1789_v39 = vmul.f32 %v1767_v9, %v964_v49  ;;  %v1828_v49 = vld [vmem:[%s2938_s23] sm:$0xff] (%p2287_p4)  ;;  %v1832_v51 = vld [vmem:[%s2938_s23 + $0x10] sm:$0xff] (%p2287_p4) }
 0x76a   : > { %1800 = vst [vmem:[%s2938_s23 + $0x30] sm:$0xff] %v1788_v45  ;;  %1829 = vst [vmem:[%s1815_s25] sm:$0xff] (%p2287_p4), %v1828_v49 }
 0x76b   : > { %1801 = vst [vmem:[%s2938_s23 + $0x38] sm:$0xff] %v1789_v39  ;;  %v1771_v40 = vpop.f32.mrb[24].mxu1  ;;  %1833 = vst [vmem:[%s1815_s25 + $0x20] sm:$0xff] (%p2287_p4), %v1832_v51 }
 0x76c   : > { %v1790_v33 = vmul.f32 %v1771_v40, %v965_v54  ;;  %v1773_v0 = vpop.f32.mrb[25].mxu1 }
 0x76d   : > { %v1791_v19 = vmul.f32 %v1773_v0, %v966_v53  ;;  %1812 = sbr.rel (!%p2287_p4) target bundleno = 1916 (0x77c), region = 80  ;;  %v1834_v53 = vld [vmem:[%s2938_s23 + $0x18] sm:$0xff] (%p2287_p4)  ;;  %v1836_v54 = vld [vmem:[%s2938_s23 + $0x20] sm:$0xff] (%p2287_p4) }
 0x76e   : > { %1802 = vst [vmem:[%s2938_s23 + $0x40] sm:$0xff] %v1790_v33  ;;  %v1838_v52 = vld [vmem:[%s2938_s23 + $0x28] sm:$0xff] (%p2287_p4)  ;;  %1835 = vst [vmem:[%s1815_s25 + $0x28] sm:$0xff] (%p2287_p4), %v1834_v53 }
 0x76f   : > { %1803 = vst [vmem:[%s2938_s23 + $0x48] sm:$0xff] %v1791_v19  ;;  %v1777_v42 = vpop.f32.mrb[26].mxu1  ;;  %1837 = vst [vmem:[%s1815_s25 + $0x40] sm:$0xff] (%p2287_p4), %v1836_v54 }
 0x770   : > { %v1792_v50 = vmul.f32 %v1777_v42, %v1268_v59  ;;  %v1779_v55 = vpop.f32.mrb[27].mxu1  ;;  %1839 = vst [vmem:[%s1815_s25 + $0x48] sm:$0xff] (%p2287_p4), %v1838_v52 }
 0x771   : > { %v1793_v21 = vmul.f32 %v1779_v55, %v1269_v58  ;;  %v1840_v36 = vld [vmem:[%s2938_s23 + $0x30] sm:$0xff] (%p2287_p4) }
 0x772   : > { %1804 = vst [vmem:[%s2938_s23 + $0x50] sm:$0xff] %v1792_v50  ;;  %v1842_v58 = vld [vmem:[%s2938_s23 + $0x38] sm:$0xff] (%p2287_p4)  ;;  %1841 = vst [vmem:[%s1815_s25 + $0x60] sm:$0xff] (%p2287_p4), %v1840_v36 }
 0x773   : > { %1805 = vst [vmem:[%s2938_s23 + $0x58] sm:$0xff] %v1793_v21  ;;  %1843 = vst [vmem:[%s1815_s25 + $0x68] sm:$0xff] (%p2287_p4), %v1842_v58 }
 0x775   : > { %v1844_v59 = vld [vmem:[%s2938_s23 + $0x40] sm:$0xff] }
 0x776   : > { %1845 = vst [vmem:[%s1815_s25 + $0x80] sm:$0xff] %v1844_v59  ;;  %v1846_v35 = vld [vmem:[%s2938_s23 + $0x48] sm:$0xff] }
 0x777   : > { %1847 = vst [vmem:[%s1815_s25 + $0x88] sm:$0xff] %v1846_v35 }
 0x779   : > { %v1848_v56 = vld [vmem:[%s2938_s23 + $0x50] sm:$0xff] }
 0x77a   : > { %v1850_v57 = vld [vmem:[%s2938_s23 + $0x58] sm:$0xff]  ;;  %1849 = vst [vmem:[%s1815_s25 + $0xa0] sm:$0xff] %v1848_v56 }
 0x77b   : > { %1851 = vst [vmem:[%s1815_s25 + $0xa8] sm:$0xff] %v1850_v57 }
 0x77c PF: > { %p21_p8 = scmp.ge.s32.totalorder %s2277_s17, 4   ;;  %s3016_s29 = smov %s2169_s30 }
 0x77d   : > { %s3017_s30 = smov %s2285_s20  ;;  %s3018_s15 = smov %s2277_s17 }
 0x77e   :  { %23 = sbr.rel (!%p21_p8) target bundleno = 2 (0x2), region = 129 }

</bundles_post_ra>
